<compile_context>
chip_gen: v7x
topology: tpu7x:2x2x1
jax: 0.10.0
libtpu: 0.0.40
codegen_flags: <defaults>
</compile_context>

<pallas_src>
import numpy as np
import jax
import jax.numpy as jnp
from jax.experimental import pallas as pl
from jax.experimental.pallas import tpu as pltpu


# ------------------------------ fused kernel --------------------------------

def _ge_fused_kernel(x_ref, scw_ref, scb_ref, mcw_ref, mcb_ref, out_ref, pad_ref):
    # x_ref:   (1, 3, H, W) VMEM  (channels = H, S, V)
    # scw_ref: (9,)  SMEM, scb_ref: (1,) SMEM   -- ScNet 3x3 conv (1->1)
    # mcw_ref: (81,) SMEM, mcb_ref: (3,) SMEM   -- McNet 3x3 conv (3->3)
    # out_ref: (1, 3, H, W) VMEM
    # pad_ref: (H+2, W+2) f32 VMEM scratch (zero border, interior refilled per plane)
    H = out_ref.shape[2]
    W = out_ref.shape[3]

    # Zero the padded scratch once per image; interior stores below never touch the
    # 1-pixel border, so it provides the conv zero-padding.
    pad_ref[...] = jnp.zeros_like(pad_ref)

    hch = x_ref[0, 0]
    sch = x_ref[0, 1]
    vch = x_ref[0, 2]

    # ---------------- ScNet: 3x3 conv, 1->1 channel, zero pad 1 ----------------
    pad_ref[1:H + 1, 1:W + 1] = vch
    sc = jnp.full((H, W), scb_ref[0], dtype=jnp.float32)
    for ky in range(3):
        for kx in range(3):
            sc = sc + scw_ref[ky * 3 + kx] * pad_ref[ky:ky + H, kx:kx + W]

    # ---------------- blend + HSV -> RGB (elementwise, stays in vregs) ----------
    l = (sc + vch) * 0.5                      # output_SCNet = (ScNet(v) + v) / 2
    c = l * sch
    h6 = hch * 6.0
    xx = c * (1.0 - jnp.abs(jnp.mod(h6, 2.0) - 1.0))
    m = l - c
    # torch: idx = uint8(h*6) % 6. For h in [0, 1] that equals floor(h*6) with 6 -> 0.
    fi = jnp.floor(h6)
    idx = jnp.where(fi >= 6.0, fi - 6.0, fi)
    is0 = idx == 0.0
    is1 = idx == 1.0
    is2 = idx == 2.0
    is3 = idx == 3.0
    is4 = idx == 4.0
    is5 = idx == 5.0
    zero = jnp.zeros_like(c)
    r = jnp.where(is0 | is5, c, jnp.where(is1 | is4, xx, zero)) + m
    g = jnp.where(is1 | is2, c, jnp.where(is0 | is3, xx, zero)) + m
    b = jnp.where(is3 | is4, c, jnp.where(is2 | is5, xx, zero)) + m

    # ---------------- McNet: 3x3 conv, 3->3 channels, zero pad 1 ----------------
    # Loop order (ic, ky, kx) outer / oc inner: each shifted slice is read once and
    # reused by the 3 per-output-channel accumulators.
    accs = [jnp.full((H, W), mcb_ref[oc], dtype=jnp.float32) for oc in range(3)]
    for ic, plane in enumerate((r, g, b)):
        pad_ref[1:H + 1, 1:W + 1] = plane
        for ky in range(3):
            for kx in range(3):
                sh = pad_ref[ky:ky + H, kx:kx + W]
                for oc in range(3):
                    accs[oc] = accs[oc] + mcw_ref[((oc * 3 + ic) * 3 + ky) * 3 + kx] * sh
    for oc in range(3):
        out_ref[0, oc, :, :] = accs[oc]


# --------------------------------- wrapper ----------------------------------

_SMEM_SPEC = pl.BlockSpec(memory_space=pltpu.MemorySpace.SMEM)


def global_enhancement(x, sc_w, sc_b, mc_w, mc_b):
    # x: (B, 3, H, W) HSV image, NCHW, float32.
    B, C, H, W = x.shape
    assert C == 3
    img_spec = pl.BlockSpec((1, 3, H, W), lambda bi: (bi, 0, 0, 0))
    return pl.pallas_call(
        _ge_fused_kernel,
        out_shape=jax.ShapeDtypeStruct((B, 3, H, W), jnp.float32),
        grid_spec=pltpu.PrefetchScalarGridSpec(
            num_scalar_prefetch=0,
            grid=(B,),
            in_specs=[img_spec, _SMEM_SPEC, _SMEM_SPEC, _SMEM_SPEC, _SMEM_SPEC],
            out_specs=img_spec,
            scratch_shapes=[pltpu.VMEM((H + 2, W + 2), jnp.float32)]),
        compiler_params=pltpu.CompilerParams(
            dimension_semantics=("parallel",),
            vmem_limit_bytes=64 * 1024 * 1024),
    )(x, sc_w, sc_b, mc_w, mc_b)


# --------------------------- pure-JAX reference -----------------------------

def _ref_forward(x, sc_w, sc_b, mc_w, mc_b):
    def conv(inp, w, bias):  # NCHW / OIHW, padding 1
        y = jax.lax.conv_general_dilated(
            inp, w, (1, 1), ((1, 1), (1, 1)),
            dimension_numbers=('NCHW', 'OIHW', 'NCHW'))
        return y + bias.reshape(1, -1, 1, 1)

    h = x[:, 0:1]
    s = x[:, 1:2]
    v = x[:, 2:3]
    sc = conv(v, sc_w.reshape(1, 1, 3, 3), sc_b)
    l = (sc + v) / 2.0
    c = l * s
    h6 = h * 6.0
    xx = c * (1.0 - jnp.abs(jnp.mod(h6, 2.0) - 1.0))
    m = l - c
    fi = jnp.floor(h6)
    idx = jnp.where(fi >= 6.0, fi - 6.0, fi)
    is0 = idx == 0.0; is1 = idx == 1.0; is2 = idx == 2.0
    is3 = idx == 3.0; is4 = idx == 4.0; is5 = idx == 5.0
    zero = jnp.zeros_like(c)
    r = jnp.where(is0 | is5, c, jnp.where(is1 | is4, xx, zero)) + m
    g = jnp.where(is1 | is2, c, jnp.where(is0 | is3, xx, zero)) + m
    b = jnp.where(is3 | is4, c, jnp.where(is2 | is5, xx, zero)) + m
    rgb = jnp.concatenate([r, g, b], axis=1)
    return conv(rgb, mc_w.reshape(3, 3, 3, 3), mc_b)


# ----------------------------------- main ------------------------------------

if __name__ == "__main__":
    key = jax.random.PRNGKey(0)
    k1, k2, k3, k4, kx = jax.random.split(key, 5)

    # Deterministic conv parameter init (PyTorch-style uniform bounds).
    sc_bound = 1.0 / np.sqrt(1 * 3 * 3)
    mc_bound = 1.0 / np.sqrt(3 * 3 * 3)
    sc_w = jax.random.uniform(k1, (9,), jnp.float32, -sc_bound, sc_bound)
    sc_b = jax.random.uniform(k2, (1,), jnp.float32, -sc_bound, sc_bound)
    mc_w = jax.random.uniform(k3, (81,), jnp.float32, -mc_bound, mc_bound)
    mc_b = jax.random.uniform(k4, (3,), jnp.float32, -mc_bound, mc_bound)

    # Small HSV input, NCHW: batch=2, channels=3 (H,S,V), 16x16 spatial, values in [0,1).
    x = jax.random.uniform(kx, (2, 3, 16, 16), jnp.float32)

    out = jax.block_until_ready(global_enhancement(x, sc_w, sc_b, mc_w, mc_b))
    ref = jax.block_until_ready(_ref_forward(x, sc_w, sc_b, mc_w, mc_b))

    assert out.shape == (2, 3, 16, 16)
    np.testing.assert_allclose(np.asarray(out), np.asarray(ref),
                               rtol=1e-5, atol=1e-5)
    print("KERNEL_OK")
</pallas_src>

<mosaic_0001>
module attributes {stable_mosaic.version = 11 : i64} {
  func.func @_ge_fused_kernel(%arg0: i32, %arg1: memref<1x3x16x16xf32, #tpu.memory_space<vmem>>, %arg2: memref<9xf32, #tpu.memory_space<smem>>, %arg3: memref<1xf32, #tpu.memory_space<smem>>, %arg4: memref<81xf32, #tpu.memory_space<smem>>, %arg5: memref<3xf32, #tpu.memory_space<smem>>, %arg6: memref<1x3x16x16xf32, #tpu.memory_space<vmem>>, %arg7: memref<18x18xf32, #tpu.memory_space<vmem>>) attributes {dimension_semantics = [#tpu.dimension_semantics<parallel>], iteration_bounds = array<i64: 2>, scalar_prefetch = 0 : i64, scratch_operands = 1 : i64, tpu.core_type = #tpu.core_type<tc>, window_params = [{transform_indices = @transform_0, window_bounds = array<i64: 1, 3, 16, 16>}, {transform_indices = @transform_1, window_bounds = array<i64: 9>}, {transform_indices = @transform_2, window_bounds = array<i64: 1>}, {transform_indices = @transform_3, window_bounds = array<i64: 81>}, {transform_indices = @transform_4, window_bounds = array<i64: 3>}, {transform_indices = @transform_5, window_bounds = array<i64: 1, 3, 16, 16>}]} {
    %cst = arith.constant 0.000000e+00 : f32
    %0 = vector.broadcast %cst : f32 to vector<18x18xf32>
    %c0 = arith.constant 0 : index
    %c0_0 = arith.constant 0 : index
    %1 = vector.load %arg7[%c0, %c0_0] : memref<18x18xf32, #tpu.memory_space<vmem>>, vector<18x18xf32>
    tpu.vector_store %arg7[%c0, %c0_0], %0 {strides = array<i32>} : memref<18x18xf32, #tpu.memory_space<vmem>>, vector<18x18xf32>,
    %c0_1 = arith.constant 0 : index
    %c0_2 = arith.constant 0 : index
    %c0_3 = arith.constant 0 : index
    %c0_4 = arith.constant 0 : index
    %2 = vector.load %arg1[%c0_1, %c0_2, %c0_3, %c0_4] : memref<1x3x16x16xf32, #tpu.memory_space<vmem>>, vector<1x1x16x16xf32>
    %3 = vector.shape_cast %2 : vector<1x1x16x16xf32> to vector<16x16xf32>
    %c0_5 = arith.constant 0 : index
    %c1 = arith.constant 1 : index
    %c0_6 = arith.constant 0 : index
    %c0_7 = arith.constant 0 : index
    %4 = vector.load %arg1[%c0_5, %c1, %c0_6, %c0_7] : memref<1x3x16x16xf32, #tpu.memory_space<vmem>>, vector<1x1x16x16xf32>
    %5 = vector.shape_cast %4 : vector<1x1x16x16xf32> to vector<16x16xf32>
    %c0_8 = arith.constant 0 : index
    %c2 = arith.constant 2 : index
    %c0_9 = arith.constant 0 : index
    %c0_10 = arith.constant 0 : index
    %6 = vector.load %arg1[%c0_8, %c2, %c0_9, %c0_10] : memref<1x3x16x16xf32, #tpu.memory_space<vmem>>, vector<1x1x16x16xf32>
    %7 = vector.shape_cast %6 : vector<1x1x16x16xf32> to vector<16x16xf32>
    %c1_11 = arith.constant 1 : index
    %c1_12 = arith.constant 1 : index
    %8 = vector.load %arg7[%c1_11, %c1_12] : memref<18x18xf32, #tpu.memory_space<vmem>>, vector<16x16xf32>
    tpu.vector_store %arg7[%c1_11, %c1_12], %7 {strides = array<i32>} : memref<18x18xf32, #tpu.memory_space<vmem>>, vector<16x16xf32>,
    %c0_13 = arith.constant 0 : index
    %9 = memref.load %arg3[%c0_13] : memref<1xf32, #tpu.memory_space<smem>>
    %10 = vector.broadcast %9 : f32 to vector<16x16xf32>
    %c0_14 = arith.constant 0 : index
    %11 = memref.load %arg2[%c0_14] : memref<9xf32, #tpu.memory_space<smem>>
    %c0_15 = arith.constant 0 : index
    %c0_16 = arith.constant 0 : index
    %12 = vector.load %arg7[%c0_15, %c0_16] : memref<18x18xf32, #tpu.memory_space<vmem>>, vector<16x16xf32>
    %13 = vector.broadcast %11 : f32 to vector<16x16xf32>
    %14 = arith.mulf %13, %12 : vector<16x16xf32>
    %15 = arith.addf %10, %14 : vector<16x16xf32>
    %c1_17 = arith.constant 1 : index
    %16 = memref.load %arg2[%c1_17] : memref<9xf32, #tpu.memory_space<smem>>
    %c0_18 = arith.constant 0 : index
    %c1_19 = arith.constant 1 : index
    %17 = vector.load %arg7[%c0_18, %c1_19] : memref<18x18xf32, #tpu.memory_space<vmem>>, vector<16x16xf32>
    %18 = vector.broadcast %16 : f32 to vector<16x16xf32>
    %19 = arith.mulf %18, %17 : vector<16x16xf32>
    %20 = arith.addf %15, %19 : vector<16x16xf32>
    %c2_20 = arith.constant 2 : index
    %21 = memref.load %arg2[%c2_20] : memref<9xf32, #tpu.memory_space<smem>>
    %c0_21 = arith.constant 0 : index
    %c2_22 = arith.constant 2 : index
    %22 = vector.load %arg7[%c0_21, %c2_22] : memref<18x18xf32, #tpu.memory_space<vmem>>, vector<16x16xf32>
    %23 = vector.broadcast %21 : f32 to vector<16x16xf32>
    %24 = arith.mulf %23, %22 : vector<16x16xf32>
    %25 = arith.addf %20, %24 : vector<16x16xf32>
    %c3 = arith.constant 3 : index
    %26 = memref.load %arg2[%c3] : memref<9xf32, #tpu.memory_space<smem>>
    %c1_23 = arith.constant 1 : index
    %c0_24 = arith.constant 0 : index
    %27 = vector.load %arg7[%c1_23, %c0_24] : memref<18x18xf32, #tpu.memory_space<vmem>>, vector<16x16xf32>
    %28 = vector.broadcast %26 : f32 to vector<16x16xf32>
    %29 = arith.mulf %28, %27 : vector<16x16xf32>
    %30 = arith.addf %25, %29 : vector<16x16xf32>
    %c4 = arith.constant 4 : index
    %31 = memref.load %arg2[%c4] : memref<9xf32, #tpu.memory_space<smem>>
    %c1_25 = arith.constant 1 : index
    %c1_26 = arith.constant 1 : index
    %32 = vector.load %arg7[%c1_25, %c1_26] : memref<18x18xf32, #tpu.memory_space<vmem>>, vector<16x16xf32>
    %33 = vector.broadcast %31 : f32 to vector<16x16xf32>
    %34 = arith.mulf %33, %32 : vector<16x16xf32>
    %35 = arith.addf %30, %34 : vector<16x16xf32>
    %c5 = arith.constant 5 : index
    %36 = memref.load %arg2[%c5] : memref<9xf32, #tpu.memory_space<smem>>
    %c1_27 = arith.constant 1 : index
    %c2_28 = arith.constant 2 : index
    %37 = vector.load %arg7[%c1_27, %c2_28] : memref<18x18xf32, #tpu.memory_space<vmem>>, vector<16x16xf32>
    %38 = vector.broadcast %36 : f32 to vector<16x16xf32>
    %39 = arith.mulf %38, %37 : vector<16x16xf32>
    %40 = arith.addf %35, %39 : vector<16x16xf32>
    %c6 = arith.constant 6 : index
    %41 = memref.load %arg2[%c6] : memref<9xf32, #tpu.memory_space<smem>>
    %c2_29 = arith.constant 2 : index
    %c0_30 = arith.constant 0 : index
    %42 = vector.load %arg7[%c2_29, %c0_30] : memref<18x18xf32, #tpu.memory_space<vmem>>, vector<16x16xf32>
    %43 = vector.broadcast %41 : f32 to vector<16x16xf32>
    %44 = arith.mulf %43, %42 : vector<16x16xf32>
    %45 = arith.addf %40, %44 : vector<16x16xf32>
    %c7 = arith.constant 7 : index
    %46 = memref.load %arg2[%c7] : memref<9xf32, #tpu.memory_space<smem>>
    %c2_31 = arith.constant 2 : index
    %c1_32 = arith.constant 1 : index
    %47 = vector.load %arg7[%c2_31, %c1_32] : memref<18x18xf32, #tpu.memory_space<vmem>>, vector<16x16xf32>
    %48 = vector.broadcast %46 : f32 to vector<16x16xf32>
    %49 = arith.mulf %48, %47 : vector<16x16xf32>
    %50 = arith.addf %45, %49 : vector<16x16xf32>
    %c8 = arith.constant 8 : index
    %51 = memref.load %arg2[%c8] : memref<9xf32, #tpu.memory_space<smem>>
    %c2_33 = arith.constant 2 : index
    %c2_34 = arith.constant 2 : index
    %52 = vector.load %arg7[%c2_33, %c2_34] : memref<18x18xf32, #tpu.memory_space<vmem>>, vector<16x16xf32>
    %53 = vector.broadcast %51 : f32 to vector<16x16xf32>
    %54 = arith.mulf %53, %52 : vector<16x16xf32>
    %55 = arith.addf %50, %54 : vector<16x16xf32>
    %56 = arith.addf %55, %7 : vector<16x16xf32>
    %cst_35 = arith.constant 5.000000e-01 : f32
    %57 = vector.broadcast %cst_35 : f32 to vector<16x16xf32>
    %58 = arith.mulf %56, %57 : vector<16x16xf32>
    %59 = arith.mulf %58, %5 : vector<16x16xf32>
    %cst_36 = arith.constant 6.000000e+00 : f32
    %60 = vector.broadcast %cst_36 : f32 to vector<16x16xf32>
    %61 = arith.mulf %3, %60 : vector<16x16xf32>
    %cst_37 = arith.constant 2.000000e+00 : f32
    %62 = vector.broadcast %cst_37 : f32 to vector<16x16xf32>
    %63 = arith.remf %61, %62 : vector<16x16xf32>
    %cst_38 = arith.constant 0.000000e+00 : f32
    %64 = vector.broadcast %cst_38 : f32 to vector<16x16xf32>
    %65 = arith.cmpf one, %63, %64 : vector<16x16xf32>
    %cst_39 = arith.constant 0.000000e+00 : f32
    %66 = vector.broadcast %cst_39 : f32 to vector<16x16xf32>
    %67 = arith.cmpf olt, %63, %66 : vector<16x16xf32>
    %cst_40 = arith.constant 0.000000e+00 : f32
    %68 = arith.cmpf olt, %cst_37, %cst_40 : f32
    %69 = vector.broadcast %68 : i1 to vector<16x16xi1>
    %70 = vector.broadcast %69 : vector<16x16xi1> to vector<16x16xi1>
    %71 = arith.xori %67, %70 : vector<16x16xi1>
    %72 = arith.andi %71, %65 : vector<16x16xi1>
    %73 = vector.broadcast %cst_37 : f32 to vector<16x16xf32>
    %74 = arith.addf %63, %73 : vector<16x16xf32>
    %75 = arith.select %72, %74, %63 : vector<16x16xi1>, vector<16x16xf32>
    %cst_41 = arith.constant 1.000000e+00 : f32
    %76 = vector.broadcast %cst_41 : f32 to vector<16x16xf32>
    %77 = arith.subf %75, %76 : vector<16x16xf32>
    %78 = math.absf %77 : vector<16x16xf32>
    %cst_42 = arith.constant 1.000000e+00 : f32
    %79 = vector.broadcast %cst_42 : f32 to vector<16x16xf32>
    %80 = arith.subf %79, %78 : vector<16x16xf32>
    %81 = arith.mulf %59, %80 : vector<16x16xf32>
    %82 = arith.subf %58, %59 : vector<16x16xf32>
    %83 = math.floor %61 : vector<16x16xf32>
    %cst_43 = arith.constant 6.000000e+00 : f32
    %84 = vector.broadcast %cst_43 : f32 to vector<16x16xf32>
    %85 = arith.cmpf oge, %83, %84 : vector<16x16xf32>
    %cst_44 = arith.constant 6.000000e+00 : f32
    %86 = vector.broadcast %cst_44 : f32 to vector<16x16xf32>
    %87 = arith.subf %83, %86 : vector<16x16xf32>
    %88 = arith.select %85, %87, %83 : vector<16x16xi1>, vector<16x16xf32>
    %cst_45 = arith.constant 0.000000e+00 : f32
    %89 = vector.broadcast %cst_45 : f32 to vector<16x16xf32>
    %90 = arith.cmpf oeq, %88, %89 : vector<16x16xf32>
    %cst_46 = arith.constant 1.000000e+00 : f32
    %91 = vector.broadcast %cst_46 : f32 to vector<16x16xf32>
    %92 = arith.cmpf oeq, %88, %91 : vector<16x16xf32>
    %cst_47 = arith.constant 2.000000e+00 : f32
    %93 = vector.broadcast %cst_47 : f32 to vector<16x16xf32>
    %94 = arith.cmpf oeq, %88, %93 : vector<16x16xf32>
    %cst_48 = arith.constant 3.000000e+00 : f32
    %95 = vector.broadcast %cst_48 : f32 to vector<16x16xf32>
    %96 = arith.cmpf oeq, %88, %95 : vector<16x16xf32>
    %cst_49 = arith.constant 4.000000e+00 : f32
    %97 = vector.broadcast %cst_49 : f32 to vector<16x16xf32>
    %98 = arith.cmpf oeq, %88, %97 : vector<16x16xf32>
    %cst_50 = arith.constant 5.000000e+00 : f32
    %99 = vector.broadcast %cst_50 : f32 to vector<16x16xf32>
    %100 = arith.cmpf oeq, %88, %99 : vector<16x16xf32>
    %cst_51 = arith.constant 0.000000e+00 : f32
    %101 = vector.broadcast %cst_51 : f32 to vector<16x16xf32>
    %102 = arith.ori %90, %100 : vector<16x16xi1>
    %103 = arith.ori %92, %98 : vector<16x16xi1>
    %104 = arith.select %103, %81, %101 : vector<16x16xi1>, vector<16x16xf32>
    %105 = arith.select %102, %59, %104 : vector<16x16xi1>, vector<16x16xf32>
    %106 = arith.addf %105, %82 : vector<16x16xf32>
    %107 = arith.ori %92, %94 : vector<16x16xi1>
    %108 = arith.ori %90, %96 : vector<16x16xi1>
    %109 = arith.select %108, %81, %101 : vector<16x16xi1>, vector<16x16xf32>
    %110 = arith.select %107, %59, %109 : vector<16x16xi1>, vector<16x16xf32>
    %111 = arith.addf %110, %82 : vector<16x16xf32>
    %112 = arith.ori %96, %98 : vector<16x16xi1>
    %113 = arith.ori %94, %100 : vector<16x16xi1>
    %114 = arith.select %113, %81, %101 : vector<16x16xi1>, vector<16x16xf32>
    %115 = arith.select %112, %59, %114 : vector<16x16xi1>, vector<16x16xf32>
    %116 = arith.addf %115, %82 : vector<16x16xf32>
    %c0_52 = arith.constant 0 : index
    %117 = memref.load %arg5[%c0_52] : memref<3xf32, #tpu.memory_space<smem>>
    %118 = vector.broadcast %117 : f32 to vector<16x16xf32>
    %c1_53 = arith.constant 1 : index
    %119 = memref.load %arg5[%c1_53] : memref<3xf32, #tpu.memory_space<smem>>
    %120 = vector.broadcast %119 : f32 to vector<16x16xf32>
    %c2_54 = arith.constant 2 : index
    %121 = memref.load %arg5[%c2_54] : memref<3xf32, #tpu.memory_space<smem>>
    %122 = vector.broadcast %121 : f32 to vector<16x16xf32>
    %c1_55 = arith.constant 1 : index
    %c1_56 = arith.constant 1 : index
    %123 = vector.load %arg7[%c1_55, %c1_56] : memref<18x18xf32, #tpu.memory_space<vmem>>, vector<16x16xf32>
    tpu.vector_store %arg7[%c1_55, %c1_56], %106 {strides = array<i32>} : memref<18x18xf32, #tpu.memory_space<vmem>>, vector<16x16xf32>,
    %c0_57 = arith.constant 0 : index
    %c0_58 = arith.constant 0 : index
    %124 = vector.load %arg7[%c0_57, %c0_58] : memref<18x18xf32, #tpu.memory_space<vmem>>, vector<16x16xf32>
    %c0_59 = arith.constant 0 : index
    %125 = memref.load %arg4[%c0_59] : memref<81xf32, #tpu.memory_space<smem>>
    %126 = vector.broadcast %125 : f32 to vector<16x16xf32>
    %127 = arith.mulf %126, %124 : vector<16x16xf32>
    %128 = arith.addf %118, %127 : vector<16x16xf32>
    %c27 = arith.constant 27 : index
    %129 = memref.load %arg4[%c27] : memref<81xf32, #tpu.memory_space<smem>>
    %130 = vector.broadcast %129 : f32 to vector<16x16xf32>
    %131 = arith.mulf %130, %124 : vector<16x16xf32>
    %132 = arith.addf %120, %131 : vector<16x16xf32>
    %c54 = arith.constant 54 : index
    %133 = memref.load %arg4[%c54] : memref<81xf32, #tpu.memory_space<smem>>
    %134 = vector.broadcast %133 : f32 to vector<16x16xf32>
    %135 = arith.mulf %134, %124 : vector<16x16xf32>
    %136 = arith.addf %122, %135 : vector<16x16xf32>
    %c0_60 = arith.constant 0 : index
    %c1_61 = arith.constant 1 : index
    %137 = vector.load %arg7[%c0_60, %c1_61] : memref<18x18xf32, #tpu.memory_space<vmem>>, vector<16x16xf32>
    %c1_62 = arith.constant 1 : index
    %138 = memref.load %arg4[%c1_62] : memref<81xf32, #tpu.memory_space<smem>>
    %139 = vector.broadcast %138 : f32 to vector<16x16xf32>
    %140 = arith.mulf %139, %137 : vector<16x16xf32>
    %141 = arith.addf %128, %140 : vector<16x16xf32>
    %c28 = arith.constant 28 : index
    %142 = memref.load %arg4[%c28] : memref<81xf32, #tpu.memory_space<smem>>
    %143 = vector.broadcast %142 : f32 to vector<16x16xf32>
    %144 = arith.mulf %143, %137 : vector<16x16xf32>
    %145 = arith.addf %132, %144 : vector<16x16xf32>
    %c55 = arith.constant 55 : index
    %146 = memref.load %arg4[%c55] : memref<81xf32, #tpu.memory_space<smem>>
    %147 = vector.broadcast %146 : f32 to vector<16x16xf32>
    %148 = arith.mulf %147, %137 : vector<16x16xf32>
    %149 = arith.addf %136, %148 : vector<16x16xf32>
    %c0_63 = arith.constant 0 : index
    %c2_64 = arith.constant 2 : index
    %150 = vector.load %arg7[%c0_63, %c2_64] : memref<18x18xf32, #tpu.memory_space<vmem>>, vector<16x16xf32>
    %c2_65 = arith.constant 2 : index
    %151 = memref.load %arg4[%c2_65] : memref<81xf32, #tpu.memory_space<smem>>
    %152 = vector.broadcast %151 : f32 to vector<16x16xf32>
    %153 = arith.mulf %152, %150 : vector<16x16xf32>
    %154 = arith.addf %141, %153 : vector<16x16xf32>
    %c29 = arith.constant 29 : index
    %155 = memref.load %arg4[%c29] : memref<81xf32, #tpu.memory_space<smem>>
    %156 = vector.broadcast %155 : f32 to vector<16x16xf32>
    %157 = arith.mulf %156, %150 : vector<16x16xf32>
    %158 = arith.addf %145, %157 : vector<16x16xf32>
    %c56 = arith.constant 56 : index
    %159 = memref.load %arg4[%c56] : memref<81xf32, #tpu.memory_space<smem>>
    %160 = vector.broadcast %159 : f32 to vector<16x16xf32>
    %161 = arith.mulf %160, %150 : vector<16x16xf32>
    %162 = arith.addf %149, %161 : vector<16x16xf32>
    %c1_66 = arith.constant 1 : index
    %c0_67 = arith.constant 0 : index
    %163 = vector.load %arg7[%c1_66, %c0_67] : memref<18x18xf32, #tpu.memory_space<vmem>>, vector<16x16xf32>
    %c3_68 = arith.constant 3 : index
    %164 = memref.load %arg4[%c3_68] : memref<81xf32, #tpu.memory_space<smem>>
    %165 = vector.broadcast %164 : f32 to vector<16x16xf32>
    %166 = arith.mulf %165, %163 : vector<16x16xf32>
    %167 = arith.addf %154, %166 : vector<16x16xf32>
    %c30 = arith.constant 30 : index
    %168 = memref.load %arg4[%c30] : memref<81xf32, #tpu.memory_space<smem>>
    %169 = vector.broadcast %168 : f32 to vector<16x16xf32>
    %170 = arith.mulf %169, %163 : vector<16x16xf32>
    %171 = arith.addf %158, %170 : vector<16x16xf32>
    %c57 = arith.constant 57 : index
    %172 = memref.load %arg4[%c57] : memref<81xf32, #tpu.memory_space<smem>>
    %173 = vector.broadcast %172 : f32 to vector<16x16xf32>
    %174 = arith.mulf %173, %163 : vector<16x16xf32>
    %175 = arith.addf %162, %174 : vector<16x16xf32>
    %c1_69 = arith.constant 1 : index
    %c1_70 = arith.constant 1 : index
    %176 = vector.load %arg7[%c1_69, %c1_70] : memref<18x18xf32, #tpu.memory_space<vmem>>, vector<16x16xf32>
    %c4_71 = arith.constant 4 : index
    %177 = memref.load %arg4[%c4_71] : memref<81xf32, #tpu.memory_space<smem>>
    %178 = vector.broadcast %177 : f32 to vector<16x16xf32>
    %179 = arith.mulf %178, %176 : vector<16x16xf32>
    %180 = arith.addf %167, %179 : vector<16x16xf32>
    %c31 = arith.constant 31 : index
    %181 = memref.load %arg4[%c31] : memref<81xf32, #tpu.memory_space<smem>>
    %182 = vector.broadcast %181 : f32 to vector<16x16xf32>
    %183 = arith.mulf %182, %176 : vector<16x16xf32>
    %184 = arith.addf %171, %183 : vector<16x16xf32>
    %c58 = arith.constant 58 : index
    %185 = memref.load %arg4[%c58] : memref<81xf32, #tpu.memory_space<smem>>
    %186 = vector.broadcast %185 : f32 to vector<16x16xf32>
    %187 = arith.mulf %186, %176 : vector<16x16xf32>
    %188 = arith.addf %175, %187 : vector<16x16xf32>
    %c1_72 = arith.constant 1 : index
    %c2_73 = arith.constant 2 : index
    %189 = vector.load %arg7[%c1_72, %c2_73] : memref<18x18xf32, #tpu.memory_space<vmem>>, vector<16x16xf32>
    %c5_74 = arith.constant 5 : index
    %190 = memref.load %arg4[%c5_74] : memref<81xf32, #tpu.memory_space<smem>>
    %191 = vector.broadcast %190 : f32 to vector<16x16xf32>
    %192 = arith.mulf %191, %189 : vector<16x16xf32>
    %193 = arith.addf %180, %192 : vector<16x16xf32>
    %c32 = arith.constant 32 : index
    %194 = memref.load %arg4[%c32] : memref<81xf32, #tpu.memory_space<smem>>
    %195 = vector.broadcast %194 : f32 to vector<16x16xf32>
    %196 = arith.mulf %195, %189 : vector<16x16xf32>
    %197 = arith.addf %184, %196 : vector<16x16xf32>
    %c59 = arith.constant 59 : index
    %198 = memref.load %arg4[%c59] : memref<81xf32, #tpu.memory_space<smem>>
    %199 = vector.broadcast %198 : f32 to vector<16x16xf32>
    %200 = arith.mulf %199, %189 : vector<16x16xf32>
    %201 = arith.addf %188, %200 : vector<16x16xf32>
    %c2_75 = arith.constant 2 : index
    %c0_76 = arith.constant 0 : index
    %202 = vector.load %arg7[%c2_75, %c0_76] : memref<18x18xf32, #tpu.memory_space<vmem>>, vector<16x16xf32>
    %c6_77 = arith.constant 6 : index
    %203 = memref.load %arg4[%c6_77] : memref<81xf32, #tpu.memory_space<smem>>
    %204 = vector.broadcast %203 : f32 to vector<16x16xf32>
    %205 = arith.mulf %204, %202 : vector<16x16xf32>
    %206 = arith.addf %193, %205 : vector<16x16xf32>
    %c33 = arith.constant 33 : index
    %207 = memref.load %arg4[%c33] : memref<81xf32, #tpu.memory_space<smem>>
    %208 = vector.broadcast %207 : f32 to vector<16x16xf32>
    %209 = arith.mulf %208, %202 : vector<16x16xf32>
    %210 = arith.addf %197, %209 : vector<16x16xf32>
    %c60 = arith.constant 60 : index
    %211 = memref.load %arg4[%c60] : memref<81xf32, #tpu.memory_space<smem>>
    %212 = vector.broadcast %211 : f32 to vector<16x16xf32>
    %213 = arith.mulf %212, %202 : vector<16x16xf32>
    %214 = arith.addf %201, %213 : vector<16x16xf32>
    %c2_78 = arith.constant 2 : index
    %c1_79 = arith.constant 1 : index
    %215 = vector.load %arg7[%c2_78, %c1_79] : memref<18x18xf32, #tpu.memory_space<vmem>>, vector<16x16xf32>
    %c7_80 = arith.constant 7 : index
    %216 = memref.load %arg4[%c7_80] : memref<81xf32, #tpu.memory_space<smem>>
    %217 = vector.broadcast %216 : f32 to vector<16x16xf32>
    %218 = arith.mulf %217, %215 : vector<16x16xf32>
    %219 = arith.addf %206, %218 : vector<16x16xf32>
    %c34 = arith.constant 34 : index
    %220 = memref.load %arg4[%c34] : memref<81xf32, #tpu.memory_space<smem>>
    %221 = vector.broadcast %220 : f32 to vector<16x16xf32>
    %222 = arith.mulf %221, %215 : vector<16x16xf32>
    %223 = arith.addf %210, %222 : vector<16x16xf32>
    %c61 = arith.constant 61 : index
    %224 = memref.load %arg4[%c61] : memref<81xf32, #tpu.memory_space<smem>>
    %225 = vector.broadcast %224 : f32 to vector<16x16xf32>
    %226 = arith.mulf %225, %215 : vector<16x16xf32>
    %227 = arith.addf %214, %226 : vector<16x16xf32>
    %c2_81 = arith.constant 2 : index
    %c2_82 = arith.constant 2 : index
    %228 = vector.load %arg7[%c2_81, %c2_82] : memref<18x18xf32, #tpu.memory_space<vmem>>, vector<16x16xf32>
    %c8_83 = arith.constant 8 : index
    %229 = memref.load %arg4[%c8_83] : memref<81xf32, #tpu.memory_space<smem>>
    %230 = vector.broadcast %229 : f32 to vector<16x16xf32>
    %231 = arith.mulf %230, %228 : vector<16x16xf32>
    %232 = arith.addf %219, %231 : vector<16x16xf32>
    %c35 = arith.constant 35 : index
    %233 = memref.load %arg4[%c35] : memref<81xf32, #tpu.memory_space<smem>>
    %234 = vector.broadcast %233 : f32 to vector<16x16xf32>
    %235 = arith.mulf %234, %228 : vector<16x16xf32>
    %236 = arith.addf %223, %235 : vector<16x16xf32>
    %c62 = arith.constant 62 : index
    %237 = memref.load %arg4[%c62] : memref<81xf32, #tpu.memory_space<smem>>
    %238 = vector.broadcast %237 : f32 to vector<16x16xf32>
    %239 = arith.mulf %238, %228 : vector<16x16xf32>
    %240 = arith.addf %227, %239 : vector<16x16xf32>
    %c1_84 = arith.constant 1 : index
    %c1_85 = arith.constant 1 : index
    %241 = vector.load %arg7[%c1_84, %c1_85] : memref<18x18xf32, #tpu.memory_space<vmem>>, vector<16x16xf32>
    tpu.vector_store %arg7[%c1_84, %c1_85], %111 {strides = array<i32>} : memref<18x18xf32, #tpu.memory_space<vmem>>, vector<16x16xf32>,
    %c0_86 = arith.constant 0 : index
    %c0_87 = arith.constant 0 : index
    %242 = vector.load %arg7[%c0_86, %c0_87] : memref<18x18xf32, #tpu.memory_space<vmem>>, vector<16x16xf32>
    %c9 = arith.constant 9 : index
    %243 = memref.load %arg4[%c9] : memref<81xf32, #tpu.memory_space<smem>>
    %244 = vector.broadcast %243 : f32 to vector<16x16xf32>
    %245 = arith.mulf %244, %242 : vector<16x16xf32>
    %246 = arith.addf %232, %245 : vector<16x16xf32>
    %c36 = arith.constant 36 : index
    %247 = memref.load %arg4[%c36] : memref<81xf32, #tpu.memory_space<smem>>
    %248 = vector.broadcast %247 : f32 to vector<16x16xf32>
    %249 = arith.mulf %248, %242 : vector<16x16xf32>
    %250 = arith.addf %236, %249 : vector<16x16xf32>
    %c63 = arith.constant 63 : index
    %251 = memref.load %arg4[%c63] : memref<81xf32, #tpu.memory_space<smem>>
    %252 = vector.broadcast %251 : f32 to vector<16x16xf32>
    %253 = arith.mulf %252, %242 : vector<16x16xf32>
    %254 = arith.addf %240, %253 : vector<16x16xf32>
    %c0_88 = arith.constant 0 : index
    %c1_89 = arith.constant 1 : index
    %255 = vector.load %arg7[%c0_88, %c1_89] : memref<18x18xf32, #tpu.memory_space<vmem>>, vector<16x16xf32>
    %c10 = arith.constant 10 : index
    %256 = memref.load %arg4[%c10] : memref<81xf32, #tpu.memory_space<smem>>
    %257 = vector.broadcast %256 : f32 to vector<16x16xf32>
    %258 = arith.mulf %257, %255 : vector<16x16xf32>
    %259 = arith.addf %246, %258 : vector<16x16xf32>
    %c37 = arith.constant 37 : index
    %260 = memref.load %arg4[%c37] : memref<81xf32, #tpu.memory_space<smem>>
    %261 = vector.broadcast %260 : f32 to vector<16x16xf32>
    %262 = arith.mulf %261, %255 : vector<16x16xf32>
    %263 = arith.addf %250, %262 : vector<16x16xf32>
    %c64 = arith.constant 64 : index
    %264 = memref.load %arg4[%c64] : memref<81xf32, #tpu.memory_space<smem>>
    %265 = vector.broadcast %264 : f32 to vector<16x16xf32>
    %266 = arith.mulf %265, %255 : vector<16x16xf32>
    %267 = arith.addf %254, %266 : vector<16x16xf32>
    %c0_90 = arith.constant 0 : index
    %c2_91 = arith.constant 2 : index
    %268 = vector.load %arg7[%c0_90, %c2_91] : memref<18x18xf32, #tpu.memory_space<vmem>>, vector<16x16xf32>
    %c11 = arith.constant 11 : index
    %269 = memref.load %arg4[%c11] : memref<81xf32, #tpu.memory_space<smem>>
    %270 = vector.broadcast %269 : f32 to vector<16x16xf32>
    %271 = arith.mulf %270, %268 : vector<16x16xf32>
    %272 = arith.addf %259, %271 : vector<16x16xf32>
    %c38 = arith.constant 38 : index
    %273 = memref.load %arg4[%c38] : memref<81xf32, #tpu.memory_space<smem>>
    %274 = vector.broadcast %273 : f32 to vector<16x16xf32>
    %275 = arith.mulf %274, %268 : vector<16x16xf32>
    %276 = arith.addf %263, %275 : vector<16x16xf32>
    %c65 = arith.constant 65 : index
    %277 = memref.load %arg4[%c65] : memref<81xf32, #tpu.memory_space<smem>>
    %278 = vector.broadcast %277 : f32 to vector<16x16xf32>
    %279 = arith.mulf %278, %268 : vector<16x16xf32>
    %280 = arith.addf %267, %279 : vector<16x16xf32>
    %c1_92 = arith.constant 1 : index
    %c0_93 = arith.constant 0 : index
    %281 = vector.load %arg7[%c1_92, %c0_93] : memref<18x18xf32, #tpu.memory_space<vmem>>, vector<16x16xf32>
    %c12 = arith.constant 12 : index
    %282 = memref.load %arg4[%c12] : memref<81xf32, #tpu.memory_space<smem>>
    %283 = vector.broadcast %282 : f32 to vector<16x16xf32>
    %284 = arith.mulf %283, %281 : vector<16x16xf32>
    %285 = arith.addf %272, %284 : vector<16x16xf32>
    %c39 = arith.constant 39 : index
    %286 = memref.load %arg4[%c39] : memref<81xf32, #tpu.memory_space<smem>>
    %287 = vector.broadcast %286 : f32 to vector<16x16xf32>
    %288 = arith.mulf %287, %281 : vector<16x16xf32>
    %289 = arith.addf %276, %288 : vector<16x16xf32>
    %c66 = arith.constant 66 : index
    %290 = memref.load %arg4[%c66] : memref<81xf32, #tpu.memory_space<smem>>
    %291 = vector.broadcast %290 : f32 to vector<16x16xf32>
    %292 = arith.mulf %291, %281 : vector<16x16xf32>
    %293 = arith.addf %280, %292 : vector<16x16xf32>
    %c1_94 = arith.constant 1 : index
    %c1_95 = arith.constant 1 : index
    %294 = vector.load %arg7[%c1_94, %c1_95] : memref<18x18xf32, #tpu.memory_space<vmem>>, vector<16x16xf32>
    %c13 = arith.constant 13 : index
    %295 = memref.load %arg4[%c13] : memref<81xf32, #tpu.memory_space<smem>>
    %296 = vector.broadcast %295 : f32 to vector<16x16xf32>
    %297 = arith.mulf %296, %294 : vector<16x16xf32>
    %298 = arith.addf %285, %297 : vector<16x16xf32>
    %c40 = arith.constant 40 : index
    %299 = memref.load %arg4[%c40] : memref<81xf32, #tpu.memory_space<smem>>
    %300 = vector.broadcast %299 : f32 to vector<16x16xf32>
    %301 = arith.mulf %300, %294 : vector<16x16xf32>
    %302 = arith.addf %289, %301 : vector<16x16xf32>
    %c67 = arith.constant 67 : index
    %303 = memref.load %arg4[%c67] : memref<81xf32, #tpu.memory_space<smem>>
    %304 = vector.broadcast %303 : f32 to vector<16x16xf32>
    %305 = arith.mulf %304, %294 : vector<16x16xf32>
    %306 = arith.addf %293, %305 : vector<16x16xf32>
    %c1_96 = arith.constant 1 : index
    %c2_97 = arith.constant 2 : index
    %307 = vector.load %arg7[%c1_96, %c2_97] : memref<18x18xf32, #tpu.memory_space<vmem>>, vector<16x16xf32>
    %c14 = arith.constant 14 : index
    %308 = memref.load %arg4[%c14] : memref<81xf32, #tpu.memory_space<smem>>
    %309 = vector.broadcast %308 : f32 to vector<16x16xf32>
    %310 = arith.mulf %309, %307 : vector<16x16xf32>
    %311 = arith.addf %298, %310 : vector<16x16xf32>
    %c41 = arith.constant 41 : index
    %312 = memref.load %arg4[%c41] : memref<81xf32, #tpu.memory_space<smem>>
    %313 = vector.broadcast %312 : f32 to vector<16x16xf32>
    %314 = arith.mulf %313, %307 : vector<16x16xf32>
    %315 = arith.addf %302, %314 : vector<16x16xf32>
    %c68 = arith.constant 68 : index
    %316 = memref.load %arg4[%c68] : memref<81xf32, #tpu.memory_space<smem>>
    %317 = vector.broadcast %316 : f32 to vector<16x16xf32>
    %318 = arith.mulf %317, %307 : vector<16x16xf32>
    %319 = arith.addf %306, %318 : vector<16x16xf32>
    %c2_98 = arith.constant 2 : index
    %c0_99 = arith.constant 0 : index
    %320 = vector.load %arg7[%c2_98, %c0_99] : memref<18x18xf32, #tpu.memory_space<vmem>>, vector<16x16xf32>
    %c15 = arith.constant 15 : index
    %321 = memref.load %arg4[%c15] : memref<81xf32, #tpu.memory_space<smem>>
    %322 = vector.broadcast %321 : f32 to vector<16x16xf32>
    %323 = arith.mulf %322, %320 : vector<16x16xf32>
    %324 = arith.addf %311, %323 : vector<16x16xf32>
    %c42 = arith.constant 42 : index
    %325 = memref.load %arg4[%c42] : memref<81xf32, #tpu.memory_space<smem>>
    %326 = vector.broadcast %325 : f32 to vector<16x16xf32>
    %327 = arith.mulf %326, %320 : vector<16x16xf32>
    %328 = arith.addf %315, %327 : vector<16x16xf32>
    %c69 = arith.constant 69 : index
    %329 = memref.load %arg4[%c69] : memref<81xf32, #tpu.memory_space<smem>>
    %330 = vector.broadcast %329 : f32 to vector<16x16xf32>
    %331 = arith.mulf %330, %320 : vector<16x16xf32>
    %332 = arith.addf %319, %331 : vector<16x16xf32>
    %c2_100 = arith.constant 2 : index
    %c1_101 = arith.constant 1 : index
    %333 = vector.load %arg7[%c2_100, %c1_101] : memref<18x18xf32, #tpu.memory_space<vmem>>, vector<16x16xf32>
    %c16 = arith.constant 16 : index
    %334 = memref.load %arg4[%c16] : memref<81xf32, #tpu.memory_space<smem>>
    %335 = vector.broadcast %334 : f32 to vector<16x16xf32>
    %336 = arith.mulf %335, %333 : vector<16x16xf32>
    %337 = arith.addf %324, %336 : vector<16x16xf32>
    %c43 = arith.constant 43 : index
    %338 = memref.load %arg4[%c43] : memref<81xf32, #tpu.memory_space<smem>>
    %339 = vector.broadcast %338 : f32 to vector<16x16xf32>
    %340 = arith.mulf %339, %333 : vector<16x16xf32>
    %341 = arith.addf %328, %340 : vector<16x16xf32>
    %c70 = arith.constant 70 : index
    %342 = memref.load %arg4[%c70] : memref<81xf32, #tpu.memory_space<smem>>
    %343 = vector.broadcast %342 : f32 to vector<16x16xf32>
    %344 = arith.mulf %343, %333 : vector<16x16xf32>
    %345 = arith.addf %332, %344 : vector<16x16xf32>
    %c2_102 = arith.constant 2 : index
    %c2_103 = arith.constant 2 : index
    %346 = vector.load %arg7[%c2_102, %c2_103] : memref<18x18xf32, #tpu.memory_space<vmem>>, vector<16x16xf32>
    %c17 = arith.constant 17 : index
    %347 = memref.load %arg4[%c17] : memref<81xf32, #tpu.memory_space<smem>>
    %348 = vector.broadcast %347 : f32 to vector<16x16xf32>
    %349 = arith.mulf %348, %346 : vector<16x16xf32>
    %350 = arith.addf %337, %349 : vector<16x16xf32>
    %c44 = arith.constant 44 : index
    %351 = memref.load %arg4[%c44] : memref<81xf32, #tpu.memory_space<smem>>
    %352 = vector.broadcast %351 : f32 to vector<16x16xf32>
    %353 = arith.mulf %352, %346 : vector<16x16xf32>
    %354 = arith.addf %341, %353 : vector<16x16xf32>
    %c71 = arith.constant 71 : index
    %355 = memref.load %arg4[%c71] : memref<81xf32, #tpu.memory_space<smem>>
    %356 = vector.broadcast %355 : f32 to vector<16x16xf32>
    %357 = arith.mulf %356, %346 : vector<16x16xf32>
    %358 = arith.addf %345, %357 : vector<16x16xf32>
    %c1_104 = arith.constant 1 : index
    %c1_105 = arith.constant 1 : index
    %359 = vector.load %arg7[%c1_104, %c1_105] : memref<18x18xf32, #tpu.memory_space<vmem>>, vector<16x16xf32>
    tpu.vector_store %arg7[%c1_104, %c1_105], %116 {strides = array<i32>} : memref<18x18xf32, #tpu.memory_space<vmem>>, vector<16x16xf32>,
    %c0_106 = arith.constant 0 : index
    %c0_107 = arith.constant 0 : index
    %360 = vector.load %arg7[%c0_106, %c0_107] : memref<18x18xf32, #tpu.memory_space<vmem>>, vector<16x16xf32>
    %c18 = arith.constant 18 : index
    %361 = memref.load %arg4[%c18] : memref<81xf32, #tpu.memory_space<smem>>
    %362 = vector.broadcast %361 : f32 to vector<16x16xf32>
    %363 = arith.mulf %362, %360 : vector<16x16xf32>
    %364 = arith.addf %350, %363 : vector<16x16xf32>
    %c45 = arith.constant 45 : index
    %365 = memref.load %arg4[%c45] : memref<81xf32, #tpu.memory_space<smem>>
    %366 = vector.broadcast %365 : f32 to vector<16x16xf32>
    %367 = arith.mulf %366, %360 : vector<16x16xf32>
    %368 = arith.addf %354, %367 : vector<16x16xf32>
    %c72 = arith.constant 72 : index
    %369 = memref.load %arg4[%c72] : memref<81xf32, #tpu.memory_space<smem>>
    %370 = vector.broadcast %369 : f32 to vector<16x16xf32>
    %371 = arith.mulf %370, %360 : vector<16x16xf32>
    %372 = arith.addf %358, %371 : vector<16x16xf32>
    %c0_108 = arith.constant 0 : index
    %c1_109 = arith.constant 1 : index
    %373 = vector.load %arg7[%c0_108, %c1_109] : memref<18x18xf32, #tpu.memory_space<vmem>>, vector<16x16xf32>
    %c19 = arith.constant 19 : index
    %374 = memref.load %arg4[%c19] : memref<81xf32, #tpu.memory_space<smem>>
    %375 = vector.broadcast %374 : f32 to vector<16x16xf32>
    %376 = arith.mulf %375, %373 : vector<16x16xf32>
    %377 = arith.addf %364, %376 : vector<16x16xf32>
    %c46 = arith.constant 46 : index
    %378 = memref.load %arg4[%c46] : memref<81xf32, #tpu.memory_space<smem>>
    %379 = vector.broadcast %378 : f32 to vector<16x16xf32>
    %380 = arith.mulf %379, %373 : vector<16x16xf32>
    %381 = arith.addf %368, %380 : vector<16x16xf32>
    %c73 = arith.constant 73 : index
    %382 = memref.load %arg4[%c73] : memref<81xf32, #tpu.memory_space<smem>>
    %383 = vector.broadcast %382 : f32 to vector<16x16xf32>
    %384 = arith.mulf %383, %373 : vector<16x16xf32>
    %385 = arith.addf %372, %384 : vector<16x16xf32>
    %c0_110 = arith.constant 0 : index
    %c2_111 = arith.constant 2 : index
    %386 = vector.load %arg7[%c0_110, %c2_111] : memref<18x18xf32, #tpu.memory_space<vmem>>, vector<16x16xf32>
    %c20 = arith.constant 20 : index
    %387 = memref.load %arg4[%c20] : memref<81xf32, #tpu.memory_space<smem>>
    %388 = vector.broadcast %387 : f32 to vector<16x16xf32>
    %389 = arith.mulf %388, %386 : vector<16x16xf32>
    %390 = arith.addf %377, %389 : vector<16x16xf32>
    %c47 = arith.constant 47 : index
    %391 = memref.load %arg4[%c47] : memref<81xf32, #tpu.memory_space<smem>>
    %392 = vector.broadcast %391 : f32 to vector<16x16xf32>
    %393 = arith.mulf %392, %386 : vector<16x16xf32>
    %394 = arith.addf %381, %393 : vector<16x16xf32>
    %c74 = arith.constant 74 : index
    %395 = memref.load %arg4[%c74] : memref<81xf32, #tpu.memory_space<smem>>
    %396 = vector.broadcast %395 : f32 to vector<16x16xf32>
    %397 = arith.mulf %396, %386 : vector<16x16xf32>
    %398 = arith.addf %385, %397 : vector<16x16xf32>
    %c1_112 = arith.constant 1 : index
    %c0_113 = arith.constant 0 : index
    %399 = vector.load %arg7[%c1_112, %c0_113] : memref<18x18xf32, #tpu.memory_space<vmem>>, vector<16x16xf32>
    %c21 = arith.constant 21 : index
    %400 = memref.load %arg4[%c21] : memref<81xf32, #tpu.memory_space<smem>>
    %401 = vector.broadcast %400 : f32 to vector<16x16xf32>
    %402 = arith.mulf %401, %399 : vector<16x16xf32>
    %403 = arith.addf %390, %402 : vector<16x16xf32>
    %c48 = arith.constant 48 : index
    %404 = memref.load %arg4[%c48] : memref<81xf32, #tpu.memory_space<smem>>
    %405 = vector.broadcast %404 : f32 to vector<16x16xf32>
    %406 = arith.mulf %405, %399 : vector<16x16xf32>
    %407 = arith.addf %394, %406 : vector<16x16xf32>
    %c75 = arith.constant 75 : index
    %408 = memref.load %arg4[%c75] : memref<81xf32, #tpu.memory_space<smem>>
    %409 = vector.broadcast %408 : f32 to vector<16x16xf32>
    %410 = arith.mulf %409, %399 : vector<16x16xf32>
    %411 = arith.addf %398, %410 : vector<16x16xf32>
    %c1_114 = arith.constant 1 : index
    %c1_115 = arith.constant 1 : index
    %412 = vector.load %arg7[%c1_114, %c1_115] : memref<18x18xf32, #tpu.memory_space<vmem>>, vector<16x16xf32>
    %c22 = arith.constant 22 : index
    %413 = memref.load %arg4[%c22] : memref<81xf32, #tpu.memory_space<smem>>
    %414 = vector.broadcast %413 : f32 to vector<16x16xf32>
    %415 = arith.mulf %414, %412 : vector<16x16xf32>
    %416 = arith.addf %403, %415 : vector<16x16xf32>
    %c49 = arith.constant 49 : index
    %417 = memref.load %arg4[%c49] : memref<81xf32, #tpu.memory_space<smem>>
    %418 = vector.broadcast %417 : f32 to vector<16x16xf32>
    %419 = arith.mulf %418, %412 : vector<16x16xf32>
    %420 = arith.addf %407, %419 : vector<16x16xf32>
    %c76 = arith.constant 76 : index
    %421 = memref.load %arg4[%c76] : memref<81xf32, #tpu.memory_space<smem>>
    %422 = vector.broadcast %421 : f32 to vector<16x16xf32>
    %423 = arith.mulf %422, %412 : vector<16x16xf32>
    %424 = arith.addf %411, %423 : vector<16x16xf32>
    %c1_116 = arith.constant 1 : index
    %c2_117 = arith.constant 2 : index
    %425 = vector.load %arg7[%c1_116, %c2_117] : memref<18x18xf32, #tpu.memory_space<vmem>>, vector<16x16xf32>
    %c23 = arith.constant 23 : index
    %426 = memref.load %arg4[%c23] : memref<81xf32, #tpu.memory_space<smem>>
    %427 = vector.broadcast %426 : f32 to vector<16x16xf32>
    %428 = arith.mulf %427, %425 : vector<16x16xf32>
    %429 = arith.addf %416, %428 : vector<16x16xf32>
    %c50 = arith.constant 50 : index
    %430 = memref.load %arg4[%c50] : memref<81xf32, #tpu.memory_space<smem>>
    %431 = vector.broadcast %430 : f32 to vector<16x16xf32>
    %432 = arith.mulf %431, %425 : vector<16x16xf32>
    %433 = arith.addf %420, %432 : vector<16x16xf32>
    %c77 = arith.constant 77 : index
    %434 = memref.load %arg4[%c77] : memref<81xf32, #tpu.memory_space<smem>>
    %435 = vector.broadcast %434 : f32 to vector<16x16xf32>
    %436 = arith.mulf %435, %425 : vector<16x16xf32>
    %437 = arith.addf %424, %436 : vector<16x16xf32>
    %c2_118 = arith.constant 2 : index
    %c0_119 = arith.constant 0 : index
    %438 = vector.load %arg7[%c2_118, %c0_119] : memref<18x18xf32, #tpu.memory_space<vmem>>, vector<16x16xf32>
    %c24 = arith.constant 24 : index
    %439 = memref.load %arg4[%c24] : memref<81xf32, #tpu.memory_space<smem>>
    %440 = vector.broadcast %439 : f32 to vector<16x16xf32>
    %441 = arith.mulf %440, %438 : vector<16x16xf32>
    %442 = arith.addf %429, %441 : vector<16x16xf32>
    %c51 = arith.constant 51 : index
    %443 = memref.load %arg4[%c51] : memref<81xf32, #tpu.memory_space<smem>>
    %444 = vector.broadcast %443 : f32 to vector<16x16xf32>
    %445 = arith.mulf %444, %438 : vector<16x16xf32>
    %446 = arith.addf %433, %445 : vector<16x16xf32>
    %c78 = arith.constant 78 : index
    %447 = memref.load %arg4[%c78] : memref<81xf32, #tpu.memory_space<smem>>
    %448 = vector.broadcast %447 : f32 to vector<16x16xf32>
    %449 = arith.mulf %448, %438 : vector<16x16xf32>
    %450 = arith.addf %437, %449 : vector<16x16xf32>
    %c2_120 = arith.constant 2 : index
    %c1_121 = arith.constant 1 : index
    %451 = vector.load %arg7[%c2_120, %c1_121] : memref<18x18xf32, #tpu.memory_space<vmem>>, vector<16x16xf32>
    %c25 = arith.constant 25 : index
    %452 = memref.load %arg4[%c25] : memref<81xf32, #tpu.memory_space<smem>>
    %453 = vector.broadcast %452 : f32 to vector<16x16xf32>
    %454 = arith.mulf %453, %451 : vector<16x16xf32>
    %455 = arith.addf %442, %454 : vector<16x16xf32>
    %c52 = arith.constant 52 : index
    %456 = memref.load %arg4[%c52] : memref<81xf32, #tpu.memory_space<smem>>
    %457 = vector.broadcast %456 : f32 to vector<16x16xf32>
    %458 = arith.mulf %457, %451 : vector<16x16xf32>
    %459 = arith.addf %446, %458 : vector<16x16xf32>
    %c79 = arith.constant 79 : index
    %460 = memref.load %arg4[%c79] : memref<81xf32, #tpu.memory_space<smem>>
    %461 = vector.broadcast %460 : f32 to vector<16x16xf32>
    %462 = arith.mulf %461, %451 : vector<16x16xf32>
    %463 = arith.addf %450, %462 : vector<16x16xf32>
    %c2_122 = arith.constant 2 : index
    %c2_123 = arith.constant 2 : index
    %464 = vector.load %arg7[%c2_122, %c2_123] : memref<18x18xf32, #tpu.memory_space<vmem>>, vector<16x16xf32>
    %c26 = arith.constant 26 : index
    %465 = memref.load %arg4[%c26] : memref<81xf32, #tpu.memory_space<smem>>
    %466 = vector.broadcast %465 : f32 to vector<16x16xf32>
    %467 = arith.mulf %466, %464 : vector<16x16xf32>
    %468 = arith.addf %455, %467 : vector<16x16xf32>
    %c53 = arith.constant 53 : index
    %469 = memref.load %arg4[%c53] : memref<81xf32, #tpu.memory_space<smem>>
    %470 = vector.broadcast %469 : f32 to vector<16x16xf32>
    %471 = arith.mulf %470, %464 : vector<16x16xf32>
    %472 = arith.addf %459, %471 : vector<16x16xf32>
    %c80 = arith.constant 80 : index
    %473 = memref.load %arg4[%c80] : memref<81xf32, #tpu.memory_space<smem>>
    %474 = vector.broadcast %473 : f32 to vector<16x16xf32>
    %475 = arith.mulf %474, %464 : vector<16x16xf32>
    %476 = arith.addf %463, %475 : vector<16x16xf32>
    %c0_124 = arith.constant 0 : index
    %c0_125 = arith.constant 0 : index
    %c0_126 = arith.constant 0 : index
    %c0_127 = arith.constant 0 : index
    %477 = vector.load %arg6[%c0_124, %c0_125, %c0_126, %c0_127] : memref<1x3x16x16xf32, #tpu.memory_space<vmem>>, vector<1x1x16x16xf32>
    %478 = vector.shape_cast %477 : vector<1x1x16x16xf32> to vector<16x16xf32>
    %479 = vector.shape_cast %468 : vector<16x16xf32> to vector<1x1x16x16xf32>
    tpu.vector_store %arg6[%c0_124, %c0_125, %c0_126, %c0_127], %479 {strides = array<i32>} : memref<1x3x16x16xf32, #tpu.memory_space<vmem>>, vector<1x1x16x16xf32>,
    %c0_128 = arith.constant 0 : index
    %c1_129 = arith.constant 1 : index
    %c0_130 = arith.constant 0 : index
    %c0_131 = arith.constant 0 : index
    %480 = vector.load %arg6[%c0_128, %c1_129, %c0_130, %c0_131] : memref<1x3x16x16xf32, #tpu.memory_space<vmem>>, vector<1x1x16x16xf32>
    %481 = vector.shape_cast %480 : vector<1x1x16x16xf32> to vector<16x16xf32>
    %482 = vector.shape_cast %472 : vector<16x16xf32> to vector<1x1x16x16xf32>
    tpu.vector_store %arg6[%c0_128, %c1_129, %c0_130, %c0_131], %482 {strides = array<i32>} : memref<1x3x16x16xf32, #tpu.memory_space<vmem>>, vector<1x1x16x16xf32>,
    %c0_132 = arith.constant 0 : index
    %c2_133 = arith.constant 2 : index
    %c0_134 = arith.constant 0 : index
    %c0_135 = arith.constant 0 : index
    %483 = vector.load %arg6[%c0_132, %c2_133, %c0_134, %c0_135] : memref<1x3x16x16xf32, #tpu.memory_space<vmem>>, vector<1x1x16x16xf32>
    %484 = vector.shape_cast %483 : vector<1x1x16x16xf32> to vector<16x16xf32>
    %485 = vector.shape_cast %476 : vector<16x16xf32> to vector<1x1x16x16xf32>
    tpu.vector_store %arg6[%c0_132, %c2_133, %c0_134, %c0_135], %485 {strides = array<i32>} : memref<1x3x16x16xf32, #tpu.memory_space<vmem>>, vector<1x1x16x16xf32>,
    return
  }
  func.func @transform_0(%arg0: i32) -> (i32, i32, i32, i32) {
    %c0_i32 = arith.constant 0 : i32
    %c0_i32_0 = arith.constant 0 : i32
    %c0_i32_1 = arith.constant 0 : i32
    %c0_i32_2 = arith.constant 0 : i32
    return %arg0, %c0_i32, %c0_i32_0, %c0_i32_1 : i32, i32, i32, i32
  }
  func.func @transform_1(%arg0: i32) -> i32 {
    %c0_i32 = arith.constant 0 : i32
    %c0_i32_0 = arith.constant 0 : i32
    return %c0_i32 : i32
  }
  func.func @transform_2(%arg0: i32) -> i32 {
    %c0_i32 = arith.constant 0 : i32
    %c0_i32_0 = arith.constant 0 : i32
    return %c0_i32 : i32
  }
  func.func @transform_3(%arg0: i32) -> i32 {
    %c0_i32 = arith.constant 0 : i32
    %c0_i32_0 = arith.constant 0 : i32
    return %c0_i32 : i32
  }
  func.func @transform_4(%arg0: i32) -> i32 {
    %c0_i32 = arith.constant 0 : i32
    %c0_i32_0 = arith.constant 0 : i32
    return %c0_i32 : i32
  }
  func.func @transform_5(%arg0: i32) -> (i32, i32, i32, i32) {
    %c0_i32 = arith.constant 0 : i32
    %c0_i32_0 = arith.constant 0 : i32
    %c0_i32_1 = arith.constant 0 : i32
    %c0_i32_2 = arith.constant 0 : i32
    return %arg0, %c0_i32, %c0_i32_0, %c0_i32_1 : i32, i32, i32, i32
  }
}

</mosaic_0001>

<bundles_post_ra>
// kernel: tpu_custom_call.1
= control target key start
LH: loop header
LB: loop body
LE: loop exit
PB: predicated region body
PF: predicated region fallthrough
CT: control target
= control target key end

     0   :  { %s2912_s0 = inlined_call_operand.hbm [shape: f32[2,3,16,16], index: 0, kind: input, shape index: {}]   ;;  %s2913_s1 = inlined_call_operand.hbm [shape: f32[9], index: 1, kind: input, shape index: {}]   ;;  %s2914_s2 = inlined_call_operand.<no memory space> [shape: f32[1], index: 2, kind: input, shape index: {}]   ;;  %s2915_s3 = inlined_call_operand.hbm [shape: f32[81], index: 3, kind: input, shape index: {}]   ;;  %s2916_s4 = inlined_call_operand.hbm [shape: f32[3], index: 4, kind: input, shape index: {}]   ;;  %s2917_s5 = inlined_call_operand.hbm [shape: f32[2,3,16,16], index: 5, kind: output, shape index: {}]  }
   0x1   :  { %10 = sst [smem:[#allocation3]] %s2914_s2 }
   0x2   :  { %11 = vsyncpa [#allocation5], 0 }
   0x3   :  { %13 = vsyncpa [#allocation5 + $0x1], 0 }
   0x4   :  { %14 = vsyncpa [#allocation7], 0 }
   0x5   :  { %15 = vsyncpa [#allocation10], 0 }
   0x6   :  { %16 = vsyncpa [#allocation6], 0 }
   0x7   :  { %18 = vsyncpa [#allocation6 + $0x1], 0  ;;  %s2006_s20 = smov 0   ;;  %s2008_s21 = smov 0  }
   0x8   :  { %s2010_s22 = smov 0   ;;  %s2012_s23 = smov 0  }
   0x9 LB: > { %s2027_s2 = sadd.s32 4294967295, %s1958_s23   ;;  %s1610_s24 = sadd.s32 4294967294, %s1958_s23   ;;  %s1958_s23 = sphi %s2012_s23, %s2958_s23   ;;  %s1954_s22 = sphi %s2010_s22, %s2957_s22   ;;  %s1950_s21 = sphi %s2008_s21, %s2956_s21   ;;  %s1946_s20 = sphi %s2006_s20, %s2955_s20  }
   0xa   : > { %p44_p0 = scmp.ne.s32.totalorder %s1950_s21, %s1946_s20  ;;  %p2918_p1 = scmp.eq.s32.totalorder %s2027_s2, 0 }
   0xb   : > { %p152_p2 = scmp.eq.s32.totalorder %s2027_s2, 1  ;;  %p158_p3 = scmp.eq.s32.totalorder %s1610_s24, 1 }
   0xc   : > { %p2036_p4 = por %p2918_p1, %p44_p0  ;;  %p1611_p5 = scmp.ge.s32.totalorder %s1958_s23, 1 }
   0xd   : > { %p2041_p6 = por %p158_p3, %p44_p0  ;;  %p165_p7 = scmp.lt.s32.totalorder %s1958_s23, 3 }
   0xe   : > { %s2922_s25 = scalar_select %p2036_p4, 1, 0 }
   0xf   : > { %s2923_s26 = scalar_select %p2041_p6, 1, 0 }
  0x10   : > { %p2046_p8 = pnand %p1611_p5, %p165_p7  ;;  %s2054_s28 = sadd.s32 1, %s1958_s23  }
  0x11   : > { %s28_s30 = ssub.s32 %s1958_s23, %s2054_s28  ;;  %s31_s7 = sadd.s32 1, %s1954_s22 }
  0x12   : > { %p1746_p10 = pneg %p2046_p8  ;;  %p2064_p12 = scmp.eq.s32.totalorder %s28_s30, 0 }
  0x13   : > { %p38_p13 = scmp.ne.s32.totalorder %s1954_s22, %s1950_s21  ;;  %s1815_s10 = scalar_lea.hbm %s2915_s3, 16 }
  0x14   : > { %p2058_p11 = pnand %p1746_p10, %p2918_p1  ;;  %p1816_p0 = scmp.ne.s32.totalorder %s2915_s3, %s1815_s10 }
  0x15   : > { %p1822_p10 = scmp.lt.u32.totalorder %s1815_s10, %s2915_s3 }
  0x16   : > { %p1817_p3 = pneg %p2058_p11 }
  0x18   : > { %p1818_p5 = pnand %p1817_p3, %p1816_p0 }
  0x1a   : > { %p1819_p7 = pneg %p1818_p5 }
  0x1c   : > { %p1824_p9 = pnand %p1822_p10, %p1819_p7 }
  0x1e   : > { %1827 = shalt.err (!%p1824_p9)
}
  0x1f   : > { %s1960_s15 = smov [#allocation9]   ;;  %s1828_s24 = scalar_lea.hbm %s2913_s1, 16 }
  0x20   : > { %1752 = dma.hbm_to_smem (!%p2058_p11), %s2915_s3, 16, %s1960_s15, [#allocation10]  }
  0x21   : > { %p1829_p0 = scmp.ne.s32.totalorder %s2913_s1, %s1828_s24  ;;  %p1835_p7 = scmp.lt.u32.totalorder %s1828_s24, %s2913_s1 }
  0x23   : > { %p1831_p5 = pnand %p1829_p0, %p1817_p3 }
  0x25   : > { %p1832_p9 = pneg %p1831_p5 }
  0x27   : > { %p1837_p10 = pnand %p1835_p7, %p1832_p9 }
  0x29   : > { %1840 = shalt.err (!%p1837_p10)
}
  0x2a   : > { %s1961_s11 = smov [#allocation8]   ;;  %s1841_s16 = scalar_lea.hbm %s2916_s4, 16 }
  0x2b   : > { %1749 = dma.hbm_to_smem (!%p2058_p11), %s2913_s1, 16, %s1961_s11, [#allocation7]  }
  0x2c   : > { %p1842_p0 = scmp.ne.s32.totalorder %s2916_s4, %s1841_s16  ;;  %p1848_p7 = scmp.lt.u32.totalorder %s1841_s16, %s2916_s4 }
  0x2e   : > { %p1844_p5 = pnand %p1842_p0, %p1817_p3 }
  0x30   : > { %p1845_p9 = pneg %p1844_p5 }
  0x32   : > { %p1850_p10 = pnand %p1848_p7, %p1845_p9 }
  0x34   : > { %1853 = shalt.err (!%p1850_p10)
}
  0x35   : > { %s1962_s30 = smov [#allocation11]   ;;  %p39_p3 = scmp.eq.s32.totalorder %s1958_s23, 0 }
  0x36   : > { %1755 = dma.hbm_to_smem (!%p2058_p11), %s2916_s4, 16, %s1962_s30, [#allocation10]  }
  0x37   : > { %s2129_s10 = scalar_select %p2064_p12, %s1954_s22, %s31_s7  }
  0x38   : > { %p2137_p0 = por %p152_p2, %p38_p13  ;;  %p1767_p5 = scmp.lt.s32.totalorder %s1958_s23, 2 }
  0x39   : > { %s208_s11 = sand.u32 1, %s1954_s22   ;;  %p40_p9 = por %p39_p3, %p38_p13 }
  0x3a   : > { %s2927_s29 = scalar_select %p2137_p0, 1, 0 }
  0x3b   : > { %s1726_s12 = smul.u32 48, %s208_s11  ;;  %p2147_p7 = pnand %p1767_p5, %p40_p9 }
  0x3c   : > { %s1727_s13 = smul.u32 768, %s1958_s23  ;;  %s2158_s18 = scalar_lea.sflag [#allocation5], %s208_s11 }
  0x3d   : > { %s212_s16 = scalar_lea.vmem [#allocation4], %s1726_s12  ;;  %p1856_p11 = pneg %p2147_p7 }
  0x3e   : > { %s2154_s15 = scalar_lea.hbm %s2912_s0, %s1727_s13  ;;  %s219_s17 = sshll.u32 %s212_s16, 4  ;;  %s2156_s17 = int_to_ptr.vmem [resolvable:$true] %s219_s17 }
  0x3f   : > { %s1854_s19 = scalar_lea.hbm %s2154_s15, 768  ;;  %s1859_s8 = scalar_lea.hbm %s2912_s0, 1536 }
  0x40   : > { %p1855_p2 = scmp.ne.s32.totalorder %s2154_s15, %s1854_s19  ;;  %p1860_p10 = scmp.lt.u32.totalorder %s2154_s15, %s2912_s0 }
  0x41   : > { %p1861_p3 = scmp.lt.u32.totalorder %s1859_s8, %s1854_s19  ;;  %p1863_p9 = scmp.lt.u32.totalorder %s1854_s19, %s2154_s15 }
  0x42   : > { %p1857_p12 = pnand %p1856_p11, %p1855_p2 }
  0x43   : > { %p1862_p5 = por %p1861_p3, %p1860_p10 }
  0x44   : > { %p1858_p13 = pneg %p1857_p12 }
  0x45   : > { %p1864_p1 = por %p1863_p9, %p1862_p5 }
  0x47   : > { %p1865_p6 = pnand %p1864_p1, %p1858_p13 }
  0x49   : > { %1868 = shalt.err (!%p1865_p6)
}
  0x4a   : > { %s1869_s11 = scalar_lea.vmem %s2156_s17, 768  ;;  %s1963_s12 = smov [#allocation4]  }
  0x4b   : > { %p1870_p2 = scmp.ne.s32.totalorder %s2156_s17, %s1869_s11  ;;  %s1874_s6 = sshll.u32 %s1963_s12, 4  ;;  %s1875_s6 = int_to_ptr.vmem [resolvable:$false] %s1874_s6 }
  0x4c   : > { %s1876_s7 = scalar_lea.vmem %s1875_s6, 1536  ;;  %p1877_p4 = scmp.lt.s32.totalorder %s2156_s17, %s1875_s6 }
  0x4d   : > { %p1872_p12 = pnand %p1870_p2, %p1856_p11  ;;  %p1878_p10 = scmp.lt.s32.totalorder %s1876_s7, %s1869_s11 }
  0x4f   : > { %p1873_p0 = pneg %p1872_p12  ;;  %p1879_p3 = por %p1878_p10, %p1877_p4 }
  0x51   : > { %p1880_p5 = pnand %p1879_p3, %p1873_p0 }
  0x53   : > { %1883 = shalt.err (!%p1880_p5)
}
  0x54   : > { %s1964_s16 = smov 128   ;;  %s1965_s19 = smov 8  }
  0x55   : > { %1759 = dma.hbm_to_vmem [thread:$0]  (!%p2147_p7), %s2154_s15, 768, %s2156_s17, %s2158_s18, %s1964_s16, %s1964_s16, %s1965_s19  }
  0x56   : > { %231 = sbr.rel (%p2046_p8) target bundleno = 851 (0x353), region = 40  ;;  %s2189_s24 = sand.u32 (!%p2046_p8), 1, %s1950_s21  }
  0x57   : > { %s1728_s30 = smul.u32 (!%p2046_p8), 48, %s2189_s24  ;;  %s234_s8 = scalar_lea.sflag (!%p2046_p8), [#allocation5], %s2189_s24 }
  0x58   : > { %p2929_p1 = scmp.ne.s32.totalorder (!%p2046_p8), %s2922_s25, 0 }
  0x59   : > { %s2195_s9 = scalar_lea.vmem (!%p2046_p8), [#allocation4], %s1728_s30 }
  0x5d   : > { %1929 = dma.done.wait (%p2929_p1), %s234_s8, 768  }
  0x5e   : > { %1931 = vsyncadd (%p2929_p1), %s234_s8, 4294966528  ;;  %p2930_p4 = scmp.eq.s32.totalorder %s2027_s2, 0 }
  0x60   : > { %1933 = dma.done.wait (%p2930_p4), [#allocation7], 16   ;;  %p2931_p6 = pmov %p2930_p4 }
  0x61   : > { %p2932_p8 = pmov %p2930_p4 }
  0x62   : > { %1935 = vsyncadd (%p2931_p6), [#allocation7], 4294967280 }
  0x63   : > { %1937 = dma.done.wait (%p2932_p8), [#allocation10], 32   ;;  %p2933_p0 = pmov %p2930_p4 }
  0x65   : > { %1939 = vsyncadd (%p2933_p0), [#allocation10], 4294967264 }
  0x66   : > { %254 = sfence }
  0x67   : > { %v2210_v0 = vld [vmem:[%s2195_s9 + $0x20] sm:$0xff]  ;;  %vm277_vm0 = vcmask 146432   ;;  %s1966_s25 = smov 1   ;;  %v1967_v1 = vmov 0.0   ;;  %vm280_vm1 = vcmask 140288   ;;  %v2215_v2 = vld [vmem:[%s2195_s9 + $0x28] sm:$0xff] }
  0x68   : > { %292 = vrot.lane.b32.xlu0 %v2210_v0, %s1966_s25  ;;  %278 = vst.msk [vmem:[#allocation2] sm:$0xff] %vm277_vm0, %v1967_v1  ;;  %279 = vst.msk [vmem:[#allocation2 + $0x8] sm:$0xff] %vm277_vm0, %v1967_v1  ;;  %vm2921_vm2 = vcmask 138248   ;;  %s1626_s27 = sld [smem:[#allocation8 + $0x2]]  ;;  %s1625_s14 = sld [smem:[#allocation8 + $0x1]]  ;;  %v282_v29 = vld [vmem:[%s2195_s9] sm:$0xff] }
  0x69   : > { %281 = vst.msk [vmem:[#allocation2 + $0x10] sm:$0x3] %vm280_vm1, %v1967_v1  ;;  %s2220_s15 = sld [smem:[#allocation8 + $0x4]]  ;;  %s2223_s17 = sld [smem:[#allocation8 + $0x5]]  ;;  %v417_v30 = vmul.f32 6.0, %v282_v29  ;;  %v283_v32 = vld [vmem:[%s2195_s9 + $0x8] sm:$0xff] }
  0x6a   : > { %s1631_s18 = sld [smem:[#allocation8 + $0x7]]  ;;  %s1968_s13 = smov 126   ;;  %v2257_v34 = vmul.f32 6.0, %v283_v32 }
  0x6b   : > { %s1969_s11 = smov 127   ;;  %s1632_s12 = sld [smem:[#allocation8 + $0x8]]  ;;  %v419_v31 = vand.u32 2147483647, %v417_v30  ;;  %v428_v47 = vand.u32 2147483648, %v417_v30 }
  0x6c   : > { %294 = vrot.lane.b32.xlu0 %v2215_v2, %s1966_s25  ;;  %v430_v36 = vand.u32 2147483647, %v2257_v34  ;;  %s303_s6 = sld [smem:[#allocation8]]  ;;  %s2260_s16 = sld [smem:[#allocation8 + $0x3]]  ;;  %v439_v62 = vand.u32 2147483648, %v2257_v34 }
  0x6d   : > { %v421_v33 = vmul.f32 0.5, %v419_v31  ;;  %s301_s7 = sld [smem:[#allocation3]]  ;;  %s2262_s19 = sld [smem:[#allocation8 + $0x6]] }
  0x6e   : > { %v326_v5 = vstv %s1626_s27  ;;  %v312_v6 = vstv %s1625_s14  ;;  %v432_v38 = vmul.f32 0.5, %v430_v36  ;;  %s1641_s8 = sld [smem:[#allocation9 + $0x1]]  ;;  %s2357_s27 = sld [smem:[#allocation9 + $0x37]] }
  0x6f   : > { %v348_v11 = vstv %s2220_s15  ;;  %v362_v15 = vstv %s2223_s17  ;;  %v422_v35 = vfloor.f32 %v421_v33  ;;  %s2363_s14 = sld [smem:[#allocation9 + $0x2]]  ;;  %s2386_s15 = sld [smem:[#allocation9 + $0x38]] }
  0x70   : > { %v384_v19 = vstv %s1631_s18  ;;  %v433_v40 = vfloor.f32 %v432_v38  ;;  %s2393_s17 = sld [smem:[#allocation9 + $0x4]]  ;;  %s1651_s18 = sld [smem:[#allocation9 + $0x1f]] }
  0x71   : > { %v398_v23 = vstv %s1632_s12  ;;  %v423_v37 = vmul.f32 2.0, %v422_v35  ;;  %s1652_s12 = sld [smem:[#allocation9 + $0x3a]]  ;;  %p2952_p11 = scmp.ne.s32.totalorder %s2927_s29, 0 }
  0x72   : > { %v434_v41 = vmul.f32 2.0, %v433_v40  ;;  %v306_v42 = vstv %s303_s6  ;;  %v342_v53 = vstv %s2260_s16  ;;  %s1653_s6 = sld [smem:[#allocation9 + $0x5]]  ;;  %s1655_s16 = sld [smem:[#allocation9 + $0x3b]] }
  0x73   : > { %v424_v39 = vsub.f32 %v419_v31, %v423_v37  ;;  %v302_v48 = vstv %s301_s7  ;;  %s1654_s7 = sld [smem:[#allocation9 + $0x20]] }
  0x74   : > { %v435_v44 = vsub.f32 %v430_v36, %v434_v41  ;;  %v1621_v41 = vld [vmem:[%s2195_s9 + $0x10] sm:$0xff] }
  0x75   : > { %vm425_vm3 = vcmp.eq.f32.partialorder %v424_v39, 2.0 }
  0x76   : > { %v426_v43 = vsel %vm425_vm3, 0.0, %v424_v39  ;;  %vm436_vm4 = vcmp.eq.f32.partialorder %v435_v44, 2.0 }
  0x77   : > { %v427_v46 = vand.u32 2147483647, %v426_v43  ;;  %v437_v56 = vsel %vm436_vm4, 0.0, %v435_v44 }
  0x78   : > { %v438_v61 = vand.u32 2147483647, %v437_v56  ;;  %v1622_v56 = vld [vmem:[%s2195_s9 + $0x18] sm:$0xff]  ;;  %s1642_s9 = sld [smem:[#allocation9 + $0x1c]] }
  0x79   : > { %v429_v50 = vor.u32 %v428_v47, %v427_v46 }
  0x7b   : > { %vm441_vm5 = vcmp.ne.f32.partialorder %v429_v50, 0.0  ;;  %vm443_vm6 = vcmp.lt.f32.partialorder %v429_v50, 0.0 }
  0x7c   : > { %vm2268_vm7 = vmand %vm443_vm6, %vm441_vm5 }
  0xda   : > { %v293_v3 = vpop.permute.xlu0 %292 }
  0xdb   : > { %299 = vst.msk [vmem:[#allocation2 + $0x1] sm:$0xff] %vm2921_vm2, %v293_v3  ;;  %v378_v3 = vstv %s2262_s19  ;;  %s1659_s19 = sld [smem:[#allocation9 + $0x7]] }
  0xde   : > { %v295_v4 = vpop.permute.xlu0 %294 }
  0xdf   : > { %300 = vst.msk [vmem:[#allocation2 + $0x9] sm:$0xff] %vm2921_vm2, %v295_v4  ;;  %v447_v4 = vadd.f32 2.0, %v429_v50 }
  0xe2   : > { %v304_v7 = vld [vmem:[#allocation2] sm:$0xff] }
  0xe3   : > { %v327_v8 = vmul.f32 %v326_v5, %v304_v7  ;;  %v313_v9 = vmul.f32 %v312_v6, %v304_v7  ;;  %v2225_v10 = vld [vmem:[#allocation2 + $0x1] sm:$0xff]  ;;  %v307_v45 = vmul.f32 %v306_v42, %v304_v7 }
  0xe4   : > { %v349_v14 = vmul.f32 %v348_v11, %v2225_v10  ;;  %v363_v16 = vmul.f32 %v362_v15, %v2225_v10  ;;  %v343_v58 = vmul.f32 %v342_v53, %v2225_v10 }
  0xe5   : > { %331 = vrot.lane.b32.xlu0 %v327_v8, %s1968_s13  ;;  %317 = vrot.lane.b32.xlu1 %v313_v9, %s1969_s11  ;;  %v309_v49 = vadd.f32 %v307_v45, %v302_v48 }
  0xe6   : > { %v305_v12 = vld [vmem:[#allocation2 + $0x8] sm:$0xff] }
  0xe7   : > { %v314_v13 = vmul.f32 %v312_v6, %v305_v12  ;;  %v328_v17 = vmul.f32 %v326_v5, %v305_v12  ;;  %v2235_v18 = vld [vmem:[#allocation2 + $0x2] sm:$0xff]  ;;  %v2247_v26 = vld [vmem:[#allocation2 + $0xa] sm:$0xff]  ;;  %v308_v55 = vmul.f32 %v306_v42, %v305_v12  ;;  %v440_v12 = vor.u32 %v439_v62, %v438_v61 }
  0xe8   : > { %v2237_v20 = vld [vmem:[#allocation2 + $0x9] sm:$0xff]  ;;  %v385_v21 = vmul.f32 %v384_v19, %v2235_v18  ;;  %v399_v24 = vmul.f32 %v398_v23, %v2235_v18  ;;  %v386_v27 = vmul.f32 %v384_v19, %v2247_v26  ;;  %v400_v28 = vmul.f32 %v398_v23, %v2247_v26 }
  0xe9   : > { %353 = vrot.lane.b32.xlu0 %v349_v14, %s1969_s11  ;;  %319 = vrot.lane.b32.xlu1 %v314_v13, %s1969_s11  ;;  %v350_v22 = vmul.f32 %v348_v11, %v2237_v20  ;;  %v364_v25 = vmul.f32 %v362_v15, %v2237_v20  ;;  %v310_v1 = vadd.f32 %v308_v55, %v302_v48  ;;  %vm442_vm8 = vcmp.ne.f32.partialorder %v440_v12, 0.0 }
  0xea   : > { %v379_v10 = vmul.f32 %v378_v3, %v2235_v18  ;;  %v344_v11 = vmul.f32 %v342_v53, %v2237_v20  ;;  %v449_v15 = vsel %vm2268_vm7, %v447_v4, %v429_v50  ;;  %vm444_vm9 = vcmp.lt.f32.partialorder %v440_v12, 0.0 }
  0xeb   : > { %v1633_v23 = vadd.f32 -1.0, %v449_v15  ;;  %vm2276_vm11 = vmand %vm444_vm9, %vm442_vm8  ;;  %v380_v35 = vmul.f32 %v378_v3, %v2247_v26 }
  0xed   : > { %367 = vrot.lane.b32.xlu0 %v363_v16, %s1968_s13  ;;  %333 = vrot.lane.b32.xlu1 %v328_v17, %s1968_s13  ;;  %v461_v16 = vfloor.f32 %v417_v30  ;;  %v453_v31 = vand.u32 2147483647, %v1633_v23 }
  0xef   : > { %vm463_vm10 = vcmp.ge.f32.partialorder %v461_v16, 6.0  ;;  %v455_v43 = vsub.f32 1.0, %v453_v31 }
  0xf1   : > { %389 = vrot.lane.b32.xlu0 %v385_v21, %s1969_s11  ;;  %355 = vrot.lane.b32.xlu1 %v350_v22, %s1969_s11 }
  0xf5   : > { %403 = vrot.lane.b32.xlu0 %v399_v24, %s1968_s13  ;;  %369 = vrot.lane.b32.xlu1 %v364_v25, %s1968_s13  ;;  %v1635_v24 = vadd.f32 -6.0, %v461_v16  ;;  %v448_v25 = vadd.f32 2.0, %v440_v12 }
  0xf7   : > { %v2282_v36 = vsel %vm463_vm10, %v1635_v24, %v461_v16  ;;  %v450_v37 = vsel %vm2276_vm11, %v448_v25, %v440_v12  ;;  %v562_v24 = vstv %s1642_s9  ;;  %s1661_s9 = sld [smem:[#allocation9 + $0x3d]] }
  0xf8   : > { %vm471_vm12 = vcmp.eq.f32.partialorder %v2282_v36, 1.0  ;;  %vm477_vm13 = vcmp.eq.f32.partialorder %v2282_v36, 4.0  ;;  %vm469_vm15 = vcmp.eq.f32.partialorder %v2282_v36, 0.0  ;;  %vm475_vm0 = vcmp.eq.f32.partialorder %v2282_v36, 3.0 }
  0xf9   : > { %391 = vrot.lane.b32.xlu1 %v386_v27, %s1969_s11  ;;  %v1634_v26 = vadd.f32 -1.0, %v450_v37  ;;  %vm479_vm1 = vcmp.eq.f32.partialorder %v2282_v36, 5.0  ;;  %vm2297_vm3 = vmor %vm471_vm12, %vm477_vm13  ;;  %vm473_vm4 = vcmp.eq.f32.partialorder %v2282_v36, 2.0  ;;  %v590_v36 = vstv %s2363_s14  ;;  %s1663_s14 = sld [smem:[#allocation9 + $0x23]] }
  0xfa   : > { %vm2304_vm5 = vmor %vm469_vm15, %vm475_vm0 }
  0xfb   : > { %vm481_vm6 = vmor %vm469_vm15, %vm479_vm1 }
  0xfc   : > { %vm491_vm11 = vmor %vm471_vm12, %vm473_vm4 }
  0xfd   : > { %405 = vrot.lane.b32.xlu1 %v400_v28, %s1968_s13  ;;  %v462_v28 = vfloor.f32 %v2257_v34 }
  0xff   : > { %v1636_v40 = vadd.f32 -6.0, %v462_v28  ;;  %vm464_vm14 = vcmp.ge.f32.partialorder %v462_v28, 6.0 }
 0x101   : > { %v468_v46 = vsel %vm464_vm14, %v1636_v40, %v462_v28 }
 0x102   : > { %vm470_vm7 = vcmp.eq.f32.partialorder %v468_v46, 0.0  ;;  %vm472_vm8 = vcmp.eq.f32.partialorder %v468_v46, 1.0  ;;  %vm478_vm9 = vcmp.eq.f32.partialorder %v468_v46, 4.0  ;;  %vm480_vm10 = vcmp.eq.f32.partialorder %v468_v46, 5.0 }
 0x103   : > { %vm474_vm14 = vcmp.eq.f32.partialorder %v468_v46, 2.0  ;;  %vm2322_vm15 = vmor %vm470_vm7, %vm480_vm10 }
 0x104   : > { %vm484_vm12 = vmor %vm472_vm8, %vm478_vm9 }
 0x157   : > { %v332_v51 = vpop.permute.xlu0 %331  ;;  %v318_v52 = vpop.permute.xlu1 %317 }
 0x158   : > { %v323_v54 = vadd.f32 %v318_v52, %v309_v49 }
 0x15a   : > { %v337_v57 = vadd.f32 %v332_v51, %v323_v54  ;;  %v454_v51 = vand.u32 2147483647, %v1634_v26 }
 0x15b   : > { %v354_v59 = vpop.permute.xlu0 %353  ;;  %v320_v60 = vpop.permute.xlu1 %319 }
 0x15c   : > { %v345_v63 = vadd.f32 %v343_v58, %v337_v57  ;;  %v324_v7 = vadd.f32 %v320_v60, %v310_v1  ;;  %v456_v60 = vsub.f32 1.0, %v454_v51 }
 0x15e   : > { %v359_v6 = vadd.f32 %v354_v59, %v345_v63 }
 0x15f   : > { %v368_v8 = vpop.permute.xlu0 %367  ;;  %v334_v9 = vpop.permute.xlu1 %333 }
 0x160   : > { %v373_v13 = vadd.f32 %v368_v8, %v359_v6  ;;  %v338_v14 = vadd.f32 %v334_v9, %v324_v7 }
 0x162   : > { %v381_v17 = vadd.f32 %v379_v10, %v373_v13  ;;  %v346_v19 = vadd.f32 %v344_v11, %v338_v14 }
 0x163   : > { %v390_v21 = vpop.permute.xlu0 %389  ;;  %v356_v22 = vpop.permute.xlu1 %355 }
 0x164   : > { %v395_v18 = vadd.f32 %v390_v21, %v381_v17  ;;  %v360_v20 = vadd.f32 %v356_v22, %v346_v19  ;;  %v548_v19 = vstv %s1641_s8  ;;  %s1660_s8 = sld [smem:[#allocation9 + $0x22]] }
 0x167   : > { %v404_v29 = vpop.permute.xlu0 %403  ;;  %v370_v30 = vpop.permute.xlu1 %369 }
 0x168   : > { %v409_v32 = vadd.f32 %v404_v29, %v395_v18  ;;  %v374_v33 = vadd.f32 %v370_v30, %v360_v20  ;;  %v576_v18 = vstv %s2357_s27  ;;  %s1662_s27 = sld [smem:[#allocation9 + $0x8]] }
 0x16a   : > { %v411_v38 = vadd.f32 %v2210_v0, %v409_v32  ;;  %v382_v39 = vadd.f32 %v380_v35, %v374_v33 }
 0x16b   : > { %v392_v42 = vpop.permute.xlu1 %391 }
 0x16c   : > { %v413_v34 = vmul.f32 0.5, %v411_v38  ;;  %v396_v0 = vadd.f32 %v392_v42, %v382_v39 }
 0x16e   : > { %v415_v44 = vmul.f32 %v1621_v41, %v413_v34 }
 0x16f   : > { %v406_v47 = vpop.permute.xlu1 %405 }
 0x170   : > { %v410_v49 = vadd.f32 %v406_v47, %v396_v0  ;;  %v457_v50 = vmul.f32 %v455_v43, %v415_v44  ;;  %v459_v52 = vsub.f32 %v413_v34, %v415_v44 }
 0x172   : > { %v412_v53 = vadd.f32 %v2215_v2, %v410_v49  ;;  %v485_v54 = vsel %vm2297_vm3, %v457_v50, 0.0  ;;  %v495_v55 = vsel %vm2304_vm5, %v457_v50, 0.0  ;;  %vm476_vm3 = vcmp.eq.f32.partialorder %v468_v46, 3.0  ;;  %vm504_vm5 = vmor %vm474_vm14, %vm480_vm10 }
 0x173   : > { %v487_v57 = vsel %vm481_vm6, %v415_v44, %v485_v54  ;;  %v497_v61 = vsel %vm491_vm11, %v415_v44, %v495_v55  ;;  %vm2332_vm6 = vmor %vm470_vm7, %vm476_vm3  ;;  %v618_v46 = vstv %s2386_s15  ;;  %s1668_s15 = sld [smem:[#allocation9 + $0xa]]  ;;  %vm1483_vm10 = vcmask 130048  }
 0x174   : > { %v414_v58 = vmul.f32 0.5, %v412_v53  ;;  %v489_v59 = vadd.f32 %v487_v57, %v459_v52  ;;  %v499_v1 = vadd.f32 %v497_v61, %v459_v52  ;;  %vm502_vm2 = vmor %vm476_vm3, %vm478_vm9  ;;  %v666_v53 = vstv %s1651_s18  ;;  %s1670_s18 = sld [smem:[#allocation9 + $0x40]] }
 0x175   : > { %vm492_vm11 = vmor %vm472_vm8, %vm474_vm14  ;;  %v708_v61 = vstv %s1654_s7  ;;  %s1673_s7 = sld [smem:[#allocation9 + $0x41]] }
 0x176   : > { %v416_v62 = vmul.f32 %v1622_v56, %v414_v58  ;;  %519 = vrot.lane.b32.xlu0 %v489_v59, %s1966_s25  ;;  %vm503_vm7 = vmor %vm473_vm4, %vm479_vm1  ;;  %v680_v56 = vstv %s1652_s12  ;;  %v694_v59 = vstv %s1653_s6  ;;  %s1671_s12 = sld [smem:[#allocation9 + $0xb]]  ;;  %s1672_s6 = sld [smem:[#allocation9 + $0x26]] }
 0x177   : > { %vm501_vm8 = vmor %vm475_vm0, %vm477_vm13  ;;  %v505_v13 = vsel %vm503_vm7, %v457_v50, 0.0  ;;  %v652_v50 = vstv %s2393_s17  ;;  %s1669_s17 = sld [smem:[#allocation9 + $0x25]] }
 0x178   : > { %v458_v3 = vmul.f32 %v456_v60, %v416_v62  ;;  %v460_v4 = vsub.f32 %v414_v58, %v416_v62  ;;  %v507_v15 = vsel %vm501_vm8, %v415_v44, %v505_v13 }
 0x179   : > { %v509_v16 = vadd.f32 %v507_v15, %v459_v52 }
 0x17a   : > { %841 = vrot.lane.b32.xlu0 %v499_v1, %s1966_s25  ;;  %v486_v5 = vsel %vm484_vm12, %v458_v3, 0.0  ;;  %v506_v6 = vsel %vm504_vm5, %v458_v3, 0.0  ;;  %v496_v7 = vsel %vm2332_vm6, %v458_v3, 0.0  ;;  %v722_v1 = vstv %s1655_s16  ;;  %s1677_s16 = sld [smem:[#allocation9 + $0xd]] }
 0x17b   : > { %v488_v8 = vsel %vm2322_vm15, %v416_v62, %v486_v5  ;;  %v508_v9 = vsel %vm502_vm2, %v416_v62, %v506_v6  ;;  %v498_v12 = vsel %vm492_vm11, %v416_v62, %v496_v7  ;;  %vm2946_vm2 = vcmask 138248  }
 0x17c   : > { %v490_v10 = vadd.f32 %v488_v8, %v460_v4  ;;  %v510_v11 = vadd.f32 %v508_v9, %v460_v4  ;;  %v500_v14 = vadd.f32 %v498_v12, %v460_v4  ;;  %vm2947_vm13 = vmmov %vm2946_vm2  ;;  %v756_v5 = vstv %s1659_s19  ;;  %s1678_s19 = sld [smem:[#allocation9 + $0x28]] }
 0x17d   : > { %vm2948_vm0 = vmmov %vm2946_vm2  ;;  %v770_v8 = vstv %s1660_s8  ;;  %s1679_s8 = sld [smem:[#allocation9 + $0x43]] }
 0x17e   : > { %521 = vrot.lane.b32.xlu1 %v490_v10, %s1966_s25  ;;  %1165 = vrot.lane.b32.xlu0 %v510_v11, %s1966_s25  ;;  %vm2949_vm1 = vmmov %vm2948_vm0  ;;  %v784_v11 = vstv %s1661_s9  ;;  %s2495_s9 = sld [smem:[#allocation9 + $0xe]] }
 0x17f   : > { %vm2950_vm4 = vmmov %vm2948_vm0 }
 0x180   : > { %vm2951_vm9 = vmmov %vm2948_vm0 }
 0x182   : > { %843 = vrot.lane.b32.xlu1 %v500_v14, %s1966_s25  ;;  %v798_v14 = vstv %s1662_s27  ;;  %s2501_s27 = sld [smem:[#allocation9 + $0x29]] }
 0x186   : > { %1163 = vrot.lane.b32.xlu1 %v509_v16, %s1966_s25  ;;  %s2368_s25 = sld [smem:[#allocation9 + $0x1d]] }
 0x18c   : > { %v604_v39 = vstv %s2368_s25  ;;  %s1664_s25 = sld [smem:[#allocation9 + $0x3e]] }
 0x1e8   : > { %v520_v17 = vpop.permute.xlu0 %519 }
 0x1e9   : > { %525 = vst.msk [vmem:[#allocation2 + $0x1] sm:$0xff] %vm2946_vm2, %v520_v17  ;;  %v812_v17 = vstv %s1663_s14  ;;  %s2508_s14 = sld [smem:[#allocation9 + $0x44]] }
 0x1ec   : > { %v842_v27 = vpop.permute.xlu0 %841 }
 0x1f0   : > { %v522_v21 = vpop.permute.xlu1 %521  ;;  %v2359_v22 = vld [vmem:[#allocation2] sm:$0xff]  ;;  %v1166_v45 = vpop.permute.xlu0 %1165 }
 0x1f1   : > { %526 = vst.msk [vmem:[#allocation2 + $0x9] sm:$0xff] %vm2947_vm13, %v522_v21  ;;  %v549_v23 = vmul.f32 %v548_v19, %v2359_v22  ;;  %v563_v25 = vmul.f32 %v562_v24, %v2359_v22  ;;  %v2371_v20 = vld [vmem:[#allocation2 + $0x1] sm:$0xff]  ;;  %v577_v35 = vmul.f32 %v576_v18, %v2359_v22  ;;  %v591_v38 = vmul.f32 %v590_v36, %v2359_v22 }
 0x1f2   : > { %v605_v44 = vmul.f32 %v604_v39, %v2359_v22  ;;  %v619_v49 = vmul.f32 %v618_v46, %v2359_v22  ;;  %v653_v52 = vmul.f32 %v652_v50, %v2371_v20  ;;  %v667_v55 = vmul.f32 %v666_v53, %v2371_v20 }
 0x1f3   : > { %553 = vrot.lane.b32.xlu0 %v549_v23, %s1969_s11  ;;  %v681_v58 = vmul.f32 %v680_v56, %v2371_v20  ;;  %v695_v2 = vmul.f32 %v694_v59, %v2371_v20  ;;  %v709_v63 = vmul.f32 %v708_v61, %v2371_v20  ;;  %v723_v4 = vmul.f32 %v722_v1, %v2371_v20 }
 0x1f4   : > { %v844_v32 = vpop.permute.xlu1 %843  ;;  %v826_v23 = vstv %s1664_s25  ;;  %s2515_s25 = sld [smem:[#allocation9 + $0x10]] }
 0x1f7   : > { %567 = vrot.lane.b32.xlu0 %v563_v25, %s1969_s11 }
 0x1f8   : > { %v2373_v28 = vld [vmem:[#allocation2 + $0x8] sm:$0xff]  ;;  %v1164_v42 = vpop.permute.xlu1 %1163 }
 0x1f9   : > { %v2375_v29 = vld [vmem:[#allocation2 + $0x9] sm:$0xff]  ;;  %v550_v33 = vmul.f32 %v548_v19, %v2373_v28  ;;  %v564_v37 = vmul.f32 %v562_v24, %v2373_v28  ;;  %v578_v26 = vmul.f32 %v576_v18, %v2373_v28  ;;  %v592_v48 = vmul.f32 %v590_v36, %v2373_v28 }
 0x1fa   : > { %v2377_v30 = vld [vmem:[#allocation2 + $0x2] sm:$0xff]  ;;  %v2379_v31 = vld [vmem:[#allocation2 + $0xa] sm:$0xff]  ;;  %v606_v51 = vmul.f32 %v604_v39, %v2373_v28  ;;  %v620_v54 = vmul.f32 %v618_v46, %v2373_v28  ;;  %v654_v57 = vmul.f32 %v652_v50, %v2375_v29  ;;  %v668_v60 = vmul.f32 %v666_v53, %v2375_v29 }
 0x1fb   : > { %847 = vst.msk [vmem:[#allocation2 + $0x1] sm:$0xff] %vm2948_vm0, %v842_v27  ;;  %555 = vrot.lane.b32.xlu1 %v550_v33, %s1969_s11  ;;  %581 = vrot.lane.b32.xlu0 %v577_v35, %s1969_s11  ;;  %v682_v62 = vmul.f32 %v680_v56, %v2375_v29  ;;  %v696_v3 = vmul.f32 %v694_v59, %v2375_v29  ;;  %v870_v18 = vstv %s1668_s15  ;;  %v884_v33 = vstv %s1669_s17  ;;  %s2519_s15 = sld [smem:[#allocation9]]  ;;  %s2524_s17 = sld [smem:[#allocation9 + $0x2b]] }
 0x1fc   : > { %848 = vst.msk [vmem:[#allocation2 + $0x9] sm:$0xff] %vm2949_vm1, %v844_v32  ;;  %v710_v6 = vmul.f32 %v708_v61, %v2375_v29  ;;  %v757_v7 = vmul.f32 %v756_v5, %v2377_v30  ;;  %v724_v9 = vmul.f32 %v722_v1, %v2375_v29  ;;  %v771_v10 = vmul.f32 %v770_v8, %v2377_v30 }
 0x1fd   : > { %v758_v12 = vmul.f32 %v756_v5, %v2379_v31  ;;  %v785_v13 = vmul.f32 %v784_v11, %v2377_v30  ;;  %v772_v15 = vmul.f32 %v770_v8, %v2379_v31  ;;  %v799_v16 = vmul.f32 %v798_v14, %v2377_v30 }
 0x1fe   : > { %v786_v19 = vmul.f32 %v784_v11, %v2379_v31  ;;  %v813_v21 = vmul.f32 %v812_v17, %v2377_v30  ;;  %v800_v24 = vmul.f32 %v798_v14, %v2379_v31  ;;  %v827_v25 = vmul.f32 %v826_v23, %v2377_v30 }
 0x1ff   : > { %569 = vrot.lane.b32.xlu1 %v564_v37, %s1969_s11  ;;  %595 = vrot.lane.b32.xlu0 %v591_v38, %s1968_s13  ;;  %v814_v27 = vmul.f32 %v812_v17, %v2379_v31  ;;  %v828_v35 = vmul.f32 %v826_v23, %v2379_v31  ;;  %v898_v37 = vstv %s1670_s18  ;;  %s2528_s18 = sld [smem:[#allocation11]]  ;;  %v1078_v8 = vstv %s2515_s25  ;;  %s2564_s25 = sld [smem:[#allocation9 + $0x2c]] }
 0x201   : > { %v1092_v14 = vstv %s2524_s17  ;;  %s2590_s17 = sld [smem:[#allocation9 + $0x13]] }
 0x202   : > { %v2397_v40 = vld [vmem:[#allocation2] sm:$0xff] }
 0x203   : > { %v2399_v41 = vld [vmem:[#allocation2 + $0x1] sm:$0xff]  ;;  %v2407_v0 = vld [vmem:[#allocation2 + $0x9] sm:$0xff]  ;;  %583 = vrot.lane.b32.xlu1 %v578_v26, %s1969_s11  ;;  %609 = vrot.lane.b32.xlu0 %v605_v44, %s1968_s13  ;;  %v871_v32 = vmul.f32 %v870_v18, %v2397_v40  ;;  %v885_v36 = vmul.f32 %v884_v33, %v2397_v40  ;;  %v899_v39 = vmul.f32 %v898_v37, %v2397_v40 }
 0x204   : > { %v2401_v43 = vld [vmem:[#allocation2 + $0x8] sm:$0xff] }
 0x205   : > { %v2403_v34 = vld [vmem:[#allocation2 + $0x2] sm:$0xff]  ;;  %v2411_v47 = vld [vmem:[#allocation2 + $0xa] sm:$0xff]  ;;  %v872_v38 = vmul.f32 %v870_v18, %v2401_v43  ;;  %v886_v26 = vmul.f32 %v884_v33, %v2401_v43  ;;  %v900_v46 = vmul.f32 %v898_v37, %v2401_v43 }
 0x206   : > { %1169 = vst.msk [vmem:[#allocation2 + $0x1] sm:$0xff] %vm2950_vm4, %v1164_v42  ;;  %v912_v42 = vstv %s1671_s12  ;;  %s2530_s12 = sld [smem:[#allocation9 + $0x1b]]  ;;  %v1093_v23 = vmul.f32 %v1092_v14, %v2403_v34 }
 0x207   : > { %1170 = vst.msk [vmem:[#allocation2 + $0x9] sm:$0xff] %vm2951_vm9, %v1166_v45  ;;  %597 = vrot.lane.b32.xlu1 %v592_v48, %s1968_s13  ;;  %623 = vrot.lane.b32.xlu0 %v619_v49, %s1968_s13  ;;  %v913_v44 = vmul.f32 %v912_v42, %v2397_v40  ;;  %v926_v45 = vstv %s1672_s6  ;;  %v940_v49 = vstv %s1673_s7  ;;  %v914_v50 = vmul.f32 %v912_v42, %v2401_v43  ;;  %s2535_s6 = sld [smem:[#allocation9 + $0x36]] }
 0x208   : > { %v927_v48 = vmul.f32 %v926_v45, %v2397_v40  ;;  %v928_v53 = vmul.f32 %v926_v45, %v2401_v43  ;;  %v942_v56 = vmul.f32 %v940_v49, %v2401_v43  ;;  %s2537_s7 = sld [smem:[#allocation9 + $0x46]]  ;;  %v1080_v42 = vmul.f32 %v1078_v8, %v2411_v47 }
 0x20b   : > { %611 = vrot.lane.b32.xlu1 %v606_v51, %s1968_s13  ;;  %657 = vrot.lane.b32.xlu0 %v653_v52, %s1969_s11  ;;  %v941_v51 = vmul.f32 %v940_v49, %v2397_v40  ;;  %v974_v52 = vstv %s1677_s16  ;;  %s2542_s16 = sld [smem:[#allocation11 + $0x1]] }
 0x20c   : > { %v976_v59 = vmul.f32 %v974_v52, %v2407_v0 }
 0x20d   : > { %v542_v18 = vstv %s2535_s6  ;;  %s2615_s6 = sld [smem:[#allocation9 + $0x6]] }
 0x20e   : > { %v543_v37 = vmul.f32 %v542_v18, %v2359_v22 }
 0x20f   : > { %625 = vrot.lane.b32.xlu1 %v620_v54, %s1968_s13  ;;  %671 = vrot.lane.b32.xlu0 %v667_v55, %s1969_s11  ;;  %v975_v54 = vmul.f32 %v974_v52, %v2399_v41  ;;  %v988_v55 = vstv %s1678_s19  ;;  %s2544_s19 = sld [smem:[#allocation9 + $0x3]] }
 0x210   : > { %v990_v61 = vmul.f32 %v988_v55, %v2407_v0 }
 0x213   : > { %659 = vrot.lane.b32.xlu1 %v654_v57, %s1969_s11  ;;  %685 = vrot.lane.b32.xlu0 %v681_v58, %s1969_s11  ;;  %v989_v57 = vmul.f32 %v988_v55, %v2399_v41  ;;  %v1002_v58 = vstv %s1679_s8  ;;  %s2546_s8 = sld [smem:[#allocation9 + $0x1e]]  ;;  %v1094_v55 = vmul.f32 %v1092_v14, %v2411_v47 }
 0x214   : > { %v1004_v1 = vmul.f32 %v1002_v58, %v2407_v0 }
 0x215   : > { %v634_v33 = vstv %s2544_s19  ;;  %s2632_s19 = sld [smem:[#allocation9 + $0x2f]] }
 0x216   : > { %v635_v49 = vmul.f32 %v634_v33, %v2371_v20 }
 0x217   : > { %673 = vrot.lane.b32.xlu1 %v668_v60, %s1969_s11  ;;  %699 = vrot.lane.b32.xlu0 %v695_v2, %s1968_s13  ;;  %v1003_v60 = vmul.f32 %v1002_v58, %v2399_v41  ;;  %v1016_v2 = vstv %s2495_s9  ;;  %s2550_s9 = sld [smem:[#allocation9 + $0x11]] }
 0x21b   : > { %687 = vrot.lane.b32.xlu1 %v682_v62, %s1969_s11  ;;  %713 = vrot.lane.b32.xlu0 %v709_v63, %s1968_s13  ;;  %v1017_v62 = vmul.f32 %v1016_v2, %v2399_v41  ;;  %v1030_v63 = vstv %s2501_s27  ;;  %s2558_s27 = sld [smem:[#allocation11 + $0x2]] }
 0x21c   : > { %v1032_v11 = vmul.f32 %v1030_v63, %v2407_v0 }
 0x21f   : > { %701 = vrot.lane.b32.xlu1 %v696_v3, %s1968_s13  ;;  %727 = vrot.lane.b32.xlu0 %v723_v4, %s1968_s13  ;;  %v1031_v3 = vmul.f32 %v1030_v63, %v2399_v41  ;;  %v1044_v4 = vstv %s2508_s14  ;;  %s2560_s14 = sld [smem:[#allocation9 + $0x39]] }
 0x223   : > { %715 = vrot.lane.b32.xlu1 %v710_v6, %s1968_s13  ;;  %761 = vrot.lane.b32.xlu0 %v757_v7, %s1969_s11  ;;  %v1018_v6 = vmul.f32 %v1016_v2, %v2407_v0  ;;  %v1045_v7 = vmul.f32 %v1044_v4, %v2399_v41 }
 0x225   : > { %v646_v52 = vstv %s2560_s14  ;;  %s2662_s14 = sld [smem:[#allocation9 + $0x31]] }
 0x227   : > { %729 = vrot.lane.b32.xlu1 %v724_v9, %s1968_s13  ;;  %775 = vrot.lane.b32.xlu0 %v771_v10, %s1969_s11  ;;  %v530_v9 = vstv %s2519_s15  ;;  %s2573_s15 = sld [smem:[#allocation9 + $0x47]] }
 0x22b   : > { %763 = vrot.lane.b32.xlu1 %v758_v12, %s1969_s11  ;;  %789 = vrot.lane.b32.xlu0 %v785_v13, %s1969_s11  ;;  %v1079_v12 = vmul.f32 %v1078_v8, %v2403_v34  ;;  %v531_v13 = vmul.f32 %v530_v9, %v2359_v22 }
 0x22f   : > { %777 = vrot.lane.b32.xlu1 %v772_v15, %s1969_s11  ;;  %803 = vrot.lane.b32.xlu0 %v799_v16, %s1968_s13  ;;  %v512_v15 = vstv %s2528_s18  ;;  %v536_v16 = vstv %s2530_s12  ;;  %s2601_s18 = sld [smem:[#allocation9 + $0x2e]]  ;;  %s2611_s12 = sld [smem:[#allocation9 + $0x49]] }
 0x230   : > { %v538_v2 = vmul.f32 %v536_v16, %v2373_v28 }
 0x233   : > { %791 = vrot.lane.b32.xlu1 %v786_v19, %s1969_s11  ;;  %817 = vrot.lane.b32.xlu0 %v813_v21, %s1968_s13  ;;  %v1046_v21 = vmul.f32 %v1044_v4, %v2407_v0  ;;  %v544_v4 = vmul.f32 %v542_v18, %v2373_v28  ;;  %v2608_v18 = vld [vmem:[#allocation2] sm:$0xff] }
 0x237   : > { %805 = vrot.lane.b32.xlu1 %v800_v24, %s1968_s13  ;;  %831 = vrot.lane.b32.xlu0 %v827_v25, %s1968_s13  ;;  %v533_v24 = vadd.f32 %v531_v13, %v512_v15  ;;  %v537_v25 = vmul.f32 %v536_v16, %v2359_v22  ;;  %v636_v13 = vmul.f32 %v634_v33, %v2375_v29 }
 0x23b   : > { %819 = vrot.lane.b32.xlu1 %v814_v27, %s1968_s13  ;;  %875 = vrot.lane.b32.xlu0 %v871_v32, %s1969_s11  ;;  %v1106_v27 = vstv %s2537_s7  ;;  %v514_v32 = vstv %s2542_s16  ;;  %s2621_s7 = sld [smem:[#allocation9 + $0x14]]  ;;  %s2625_s16 = sld [smem:[#allocation9 + $0x21]] }
 0x23c   : > { %v539_v45 = vadd.f32 %v537_v25, %v514_v32 }
 0x23f   : > { %833 = vrot.lane.b32.xlu1 %v828_v35, %s1968_s13  ;;  %889 = vrot.lane.b32.xlu0 %v885_v36, %s1969_s11  ;;  %v640_v36 = vstv %s2546_s8  ;;  %s2637_s8 = sld [smem:[#allocation9 + $0x3c]] }
 0x240   : > { %v641_v58 = vmul.f32 %v640_v36, %v2371_v20 }
 0x243   : > { %877 = vrot.lane.b32.xlu1 %v872_v38, %s1969_s11  ;;  %903 = vrot.lane.b32.xlu0 %v899_v39, %s1969_s11 }
 0x247   : > { %891 = vrot.lane.b32.xlu1 %v886_v26, %s1969_s11  ;;  %917 = vrot.lane.b32.xlu0 %v913_v44, %s1968_s13  ;;  %v1107_v26 = vmul.f32 %v1106_v27, %v2403_v34  ;;  %v1120_v44 = vstv %s2550_s9  ;;  %s2641_s9 = sld [smem:[#allocation9 + $0x4a]] }
 0x24b   : > { %905 = vrot.lane.b32.xlu1 %v900_v46, %s1969_s11  ;;  %931 = vrot.lane.b32.xlu0 %v927_v48, %s1968_s13  ;;  %v532_v46 = vmul.f32 %v530_v9, %v2373_v28  ;;  %v647_v9 = vmul.f32 %v646_v52, %v2371_v20 }
 0x24f   : > { %919 = vrot.lane.b32.xlu1 %v914_v50, %s1968_s13  ;;  %945 = vrot.lane.b32.xlu0 %v941_v51, %s1968_s13  ;;  %v516_v50 = vstv %s2558_s27  ;;  %s2652_s27 = sld [smem:[#allocation9 + $0x16]] }
 0x253   : > { %933 = vrot.lane.b32.xlu1 %v928_v53, %s1968_s13  ;;  %979 = vrot.lane.b32.xlu0 %v975_v54, %s1969_s11 }
 0x257   : > { %947 = vrot.lane.b32.xlu1 %v942_v56, %s1968_s13  ;;  %993 = vrot.lane.b32.xlu0 %v989_v57, %s1969_s11  ;;  %v1121_v56 = vmul.f32 %v1120_v44, %v2403_v34  ;;  %v1134_v57 = vstv %s2564_s25  ;;  %s2672_s25 = sld [smem:[#allocation9 + $0x4c]] }
 0x258   : > { %v1135_v8 = vmul.f32 %v1134_v57, %v2403_v34 }
 0x25b   : > { %981 = vrot.lane.b32.xlu1 %v976_v59, %s1969_s11  ;;  %1007 = vrot.lane.b32.xlu0 %v1003_v60, %s1969_s11  ;;  %v534_v59 = vadd.f32 %v532_v46, %v512_v15  ;;  %v545_v60 = vadd.f32 %v543_v37, %v516_v50 }
 0x25f   : > { %995 = vrot.lane.b32.xlu1 %v990_v61, %s1969_s11  ;;  %1021 = vrot.lane.b32.xlu0 %v1017_v62, %s1968_s13 }
 0x263   : > { %1009 = vrot.lane.b32.xlu1 %v1004_v1, %s1969_s11  ;;  %1035 = vrot.lane.b32.xlu0 %v1031_v3, %s1968_s13  ;;  %v1148_v1 = vstv %s2573_s15  ;;  %s2676_s15 = sld [smem:[#allocation9 + $0x9]] }
 0x264   : > { %v1149_v20 = vmul.f32 %v1148_v1, %v2403_v34 }
 0x265   : > { %v554_v5 = vpop.permute.xlu0 %553 }
 0x266   : > { %v559_v35 = vadd.f32 %v554_v5, %v533_v24 }
 0x267   : > { %1023 = vrot.lane.b32.xlu1 %v1018_v6, %s1968_s13  ;;  %1049 = vrot.lane.b32.xlu0 %v1045_v7, %s1968_s13  ;;  %v1108_v7 = vmul.f32 %v1106_v27, %v2411_v47  ;;  %v642_v27 = vmul.f32 %v640_v36, %v2375_v29  ;;  %v1206_v36 = vstv %s2601_s18  ;;  %s2686_s18 = sld [smem:[#allocation9 + $0x24]] }
 0x269   : > { %v568_v10 = vpop.permute.xlu0 %567 }
 0x26a   : > { %v573_v22 = vadd.f32 %v568_v10, %v539_v45  ;;  %v540_v10 = vadd.f32 %v538_v2, %v514_v32 }
 0x26b   : > { %1037 = vrot.lane.b32.xlu1 %v1032_v11, %s1968_s13  ;;  %1083 = vrot.lane.b32.xlu0 %v1079_v12, %s1969_s11 }
 0x26d   : > { %v556_v17 = vpop.permute.xlu1 %555  ;;  %v582_v19 = vpop.permute.xlu0 %581 }
 0x26e   : > { %v560_v62 = vadd.f32 %v556_v17, %v534_v59  ;;  %v587_v63 = vadd.f32 %v582_v19, %v545_v60  ;;  %v1122_v19 = vmul.f32 %v1120_v44, %v2411_v47  ;;  %v648_v44 = vmul.f32 %v646_v52, %v2375_v29  ;;  %v2630_v52 = vld [vmem:[#allocation2 + $0x8] sm:$0xff] }
 0x26f   : > { %1051 = vrot.lane.b32.xlu1 %v1046_v21, %s1968_s13  ;;  %1097 = vrot.lane.b32.xlu0 %v1093_v23, %s1969_s11  ;;  %v1192_v21 = vstv %s2590_s17  ;;  %v546_v23 = vadd.f32 %v544_v4, %v516_v50  ;;  %v1207_v50 = vmul.f32 %v1206_v36, %v2608_v18  ;;  %v1220_v29 = vstv %s2611_s12  ;;  %s2682_s17 = sld [smem:[#allocation9 + $0x17]]  ;;  %s2693_s12 = sld [smem:[#allocation9 + $0x32]] }
 0x270   : > { %v1234_v60 = vstv %s2621_s7  ;;  %v1208_v4 = vmul.f32 %v1206_v36, %v2630_v52  ;;  %s2702_s7 = sld [smem:[#allocation9 + $0x4d]] }
 0x271   : > { %v570_v38 = vpop.permute.xlu1 %569  ;;  %v596_v39 = vpop.permute.xlu0 %595 }
 0x272   : > { %v601_v48 = vadd.f32 %v596_v39, %v559_v35  ;;  %v574_v28 = vadd.f32 %v570_v38, %v540_v10  ;;  %v1136_v38 = vmul.f32 %v1134_v57, %v2411_v47  ;;  %v1193_v39 = vmul.f32 %v1192_v21, %v2608_v18 }
 0x273   : > { %1085 = vrot.lane.b32.xlu1 %v1080_v42, %s1969_s11  ;;  %1111 = vrot.lane.b32.xlu0 %v1107_v26, %s1969_s11  ;;  %v1194_v57 = vmul.f32 %v1192_v21, %v2630_v52 }
 0x274   : > { %v637_v51 = vadd.f32 %v635_v49, %v601_v48  ;;  %v1150_v49 = vmul.f32 %v1148_v1, %v2411_v47 }
 0x275   : > { %v584_v53 = vpop.permute.xlu1 %583  ;;  %v610_v54 = vpop.permute.xlu0 %609 }
 0x276   : > { %v615_v61 = vadd.f32 %v610_v54, %v573_v22  ;;  %v588_v32 = vadd.f32 %v584_v53, %v546_v23  ;;  %v738_v53 = vstv %s2615_s6  ;;  %s2698_s6 = sld [smem:[#allocation9 + $0x3f]] }
 0x277   : > { %1099 = vrot.lane.b32.xlu1 %v1094_v55, %s1969_s11  ;;  %1125 = vrot.lane.b32.xlu0 %v1121_v56, %s1968_s13  ;;  %v1221_v56 = vmul.f32 %v1220_v29, %v2608_v18  ;;  %v739_v2 = vmul.f32 %v738_v53, %v2377_v30 }
 0x278   : > { %v643_v3 = vadd.f32 %v641_v58, %v615_v61  ;;  %v744_v61 = vstv %s2625_s16  ;;  %s2713_s16 = sld [smem:[#allocation9 + $0x19]] }
 0x279   : > { %v598_v5 = vpop.permute.xlu1 %597  ;;  %v624_v6 = vpop.permute.xlu0 %623 }
 0x27a   : > { %v602_v11 = vadd.f32 %v598_v5, %v560_v62  ;;  %v629_v12 = vadd.f32 %v624_v6, %v587_v63 }
 0x27b   : > { %1113 = vrot.lane.b32.xlu1 %v1108_v7, %s1969_s11  ;;  %1139 = vrot.lane.b32.xlu0 %v1135_v8, %s1968_s13  ;;  %v1248_v7 = vstv %s2632_s19  ;;  %v745_v8 = vmul.f32 %v744_v61, %v2377_v30  ;;  %s2723_s19 = sld [smem:[#allocation9 + $0x34]] }
 0x27c   : > { %v638_v14 = vadd.f32 %v636_v13, %v602_v11  ;;  %v649_v15 = vadd.f32 %v647_v9, %v629_v12  ;;  %v750_v9 = vstv %s2637_s8  ;;  %v1249_v13 = vmul.f32 %v1248_v7, %v2608_v18  ;;  %s2733_s8 = sld [smem:[#allocation9 + $0x4f]] }
 0x27d   : > { %v612_v16 = vpop.permute.xlu1 %611  ;;  %v658_v17 = vpop.permute.xlu0 %657  ;;  %v1250_v36 = vmul.f32 %v1248_v7, %v2630_v52 }
 0x27e   : > { %v616_v24 = vadd.f32 %v612_v16, %v574_v28  ;;  %v663_v25 = vadd.f32 %v658_v17, %v637_v51  ;;  %v1222_v28 = vmul.f32 %v1220_v29, %v2630_v52  ;;  %v740_v17 = vmul.f32 %v738_v53, %v2379_v31 }
 0x27f   : > { %1127 = vrot.lane.b32.xlu1 %v1122_v19, %s1968_s13  ;;  %1153 = vrot.lane.b32.xlu0 %v1149_v20, %s1968_s13  ;;  %v751_v19 = vmul.f32 %v750_v9, %v2377_v30  ;;  %v1296_v30 = vstv %s2652_s27  ;;  %s2743_s27 = sld [smem:[#allocation9 + $0x1a]] }
 0x280   : > { %v644_v33 = vadd.f32 %v642_v27, %v616_v24  ;;  %v1236_v27 = vmul.f32 %v1234_v60, %v2630_v52 }
 0x281   : > { %v626_v35 = vpop.permute.xlu1 %625  ;;  %v672_v37 = vpop.permute.xlu0 %671 }
 0x282   : > { %v630_v42 = vadd.f32 %v626_v35, %v588_v32  ;;  %v677_v26 = vadd.f32 %v672_v37, %v643_v3  ;;  %v1235_v3 = vmul.f32 %v1234_v60, %v2608_v18  ;;  %v2668_v35 = vld [vmem:[#allocation2 + $0x1] sm:$0xff]  ;;  %v746_v37 = vmul.f32 %v744_v61, %v2379_v31 }
 0x283   : > { %1141 = vrot.lane.b32.xlu1 %v1136_v38, %s1968_s13  ;;  %1197 = vrot.lane.b32.xlu0 %v1193_v39, %s1969_s11 }
 0x284   : > { %v650_v45 = vadd.f32 %v648_v44, %v630_v42 }
 0x285   : > { %v660_v46 = vpop.permute.xlu1 %659  ;;  %v686_v48 = vpop.permute.xlu0 %685 }
 0x286   : > { %v664_v22 = vadd.f32 %v660_v46, %v638_v14  ;;  %v691_v51 = vadd.f32 %v686_v48, %v649_v15  ;;  %v1262_v14 = vstv %s2641_s9  ;;  %v1310_v46 = vstv %s2662_s14  ;;  %s2737_s9 = sld [smem:[#allocation9 + $0xc]]  ;;  %s2747_s14 = sld [smem:[#allocation9 + $0x27]] }
 0x287   : > { %1155 = vrot.lane.b32.xlu1 %v1150_v49, %s1968_s13  ;;  %1211 = vrot.lane.b32.xlu0 %v1207_v50, %s1969_s11  ;;  %v752_v48 = vmul.f32 %v750_v9, %v2379_v31  ;;  %v1264_v29 = vmul.f32 %v1262_v14, %v2630_v52  ;;  %v1324_v31 = vstv %s2672_s25  ;;  %s2754_s25 = sld [smem:[#allocation9 + $0x35]] }
 0x289   : > { %v674_v54 = vpop.permute.xlu1 %673  ;;  %v700_v55 = vpop.permute.xlu0 %699 }
 0x28a   : > { %v678_v58 = vadd.f32 %v674_v54, %v644_v33  ;;  %v705_v59 = vadd.f32 %v700_v55, %v663_v25  ;;  %v1263_v25 = vmul.f32 %v1262_v14, %v2608_v18  ;;  %v2691_v55 = vld [vmem:[#allocation2 + $0x9] sm:$0xff] }
 0x28b   : > { %1225 = vrot.lane.b32.xlu0 %v1221_v56, %s1969_s11  ;;  %1199 = vrot.lane.b32.xlu1 %v1194_v57, %s1969_s11  ;;  %v852_v56 = vstv %s2676_s15  ;;  %v1298_v60 = vmul.f32 %v1296_v30, %v2691_v55  ;;  %v1312_v7 = vmul.f32 %v1310_v46, %v2691_v55  ;;  %s2759_s15 = sld [smem:[#allocation9 + $0x42]] }
 0x28c   : > { %v741_v62 = vadd.f32 %v739_v2, %v705_v59  ;;  %v1325_v59 = vmul.f32 %v1324_v31, %v2668_v35 }
 0x28d   : > { %v688_v63 = vpop.permute.xlu1 %687  ;;  %v714_v1 = vpop.permute.xlu0 %713 }
 0x28e   : > { %v692_v5 = vadd.f32 %v688_v63, %v650_v45  ;;  %v719_v6 = vadd.f32 %v714_v1, %v677_v26  ;;  %v1297_v26 = vmul.f32 %v1296_v30, %v2668_v35  ;;  %v853_v63 = vmul.f32 %v852_v56, %v2397_v40 }
 0x28f   : > { %1239 = vrot.lane.b32.xlu0 %v1235_v3, %s1968_s13  ;;  %1213 = vrot.lane.b32.xlu1 %v1208_v4, %s1969_s11  ;;  %v858_v1 = vstv %s2686_s18  ;;  %s2789_s18 = sld [smem:[#allocation9 + $0xf]] }
 0x290   : > { %v747_v10 = vadd.f32 %v745_v8, %v719_v6 }
 0x291   : > { %v702_v11 = vpop.permute.xlu1 %701  ;;  %v728_v12 = vpop.permute.xlu0 %727 }
 0x292   : > { %v706_v15 = vadd.f32 %v702_v11, %v664_v22  ;;  %v733_v16 = vadd.f32 %v728_v12, %v691_v51  ;;  %v1311_v51 = vmul.f32 %v1310_v46, %v2668_v35  ;;  %v859_v11 = vmul.f32 %v858_v1, %v2397_v40 }
 0x293   : > { %1253 = vrot.lane.b32.xlu0 %v1249_v13, %s1968_s13  ;;  %1227 = vrot.lane.b32.xlu1 %v1222_v28, %s1969_s11  ;;  %v864_v12 = vstv %s2698_s6  ;;  %s2811_s6 = sld [smem:[#allocation9 + $0x2d]] }
 0x294   : > { %v742_v20 = vadd.f32 %v740_v17, %v706_v15  ;;  %v753_v21 = vadd.f32 %v751_v19, %v733_v16  ;;  %v1326_v16 = vmul.f32 %v1324_v31, %v2691_v55  ;;  %v1366_v17 = vstv %s2702_s7  ;;  %s2814_s7 = sld [smem:[#allocation9 + $0x48]] }
 0x295   : > { %v716_v23 = vpop.permute.xlu1 %715  ;;  %v762_v24 = vpop.permute.xlu0 %761 }
 0x296   : > { %v720_v32 = vadd.f32 %v716_v23, %v678_v58  ;;  %v767_v33 = vadd.f32 %v762_v24, %v741_v62  ;;  %v1338_v62 = vstv %s2682_s17  ;;  %v865_v23 = vmul.f32 %v864_v12, %v2397_v40  ;;  %s2763_s17 = sld [smem:[#allocation9 + $0x50]] }
 0x297   : > { %1267 = vrot.lane.b32.xlu0 %v1263_v25, %s1968_s13  ;;  %1241 = vrot.lane.b32.xlu1 %v1236_v27, %s1968_s13  ;;  %v1339_v6 = vmul.f32 %v1338_v62, %v2668_v35  ;;  %v1340_v30 = vmul.f32 %v1338_v62, %v2691_v55  ;;  %v1400_v40 = vstv %s2713_s16  ;;  %s2823_s16 = sld [smem:[#allocation9 + $0x15]] }
 0x298   : > { %v748_v38 = vadd.f32 %v746_v37, %v720_v32 }
 0x299   : > { %v730_v39 = vpop.permute.xlu1 %729  ;;  %v776_v42 = vpop.permute.xlu0 %775 }
 0x29a   : > { %v734_v44 = vadd.f32 %v730_v39, %v692_v5  ;;  %v781_v45 = vadd.f32 %v776_v42, %v747_v10  ;;  %v1352_v10 = vstv %s2693_s12  ;;  %v2729_v39 = vld [vmem:[#allocation2 + $0x2] sm:$0xff]  ;;  %v860_v42 = vmul.f32 %v858_v1, %v2401_v43  ;;  %s2799_s12 = sld [smem:[#allocation9 + $0x45]] }
 0x29b   : > { %1301 = vrot.lane.b32.xlu0 %v1297_v26, %s1969_s11  ;;  %1255 = vrot.lane.b32.xlu1 %v1250_v36, %s1968_s13  ;;  %v1353_v15 = vmul.f32 %v1352_v10, %v2668_v35  ;;  %v1354_v46 = vmul.f32 %v1352_v10, %v2691_v55 }
 0x29c   : > { %v754_v49 = vadd.f32 %v752_v48, %v734_v44 }
 0x29d   : > { %v764_v50 = vpop.permute.xlu1 %763  ;;  %v790_v22 = vpop.permute.xlu0 %789 }
 0x29e   : > { %v768_v53 = vadd.f32 %v764_v50, %v742_v20  ;;  %v795_v54 = vadd.f32 %v790_v22, %v753_v21  ;;  %v854_v21 = vmul.f32 %v852_v56, %v2401_v43  ;;  %v1414_v50 = vstv %s2723_s19  ;;  %s2826_s19 = sld [smem:[#allocation9 + $0x30]] }
 0x29f   : > { %1315 = vrot.lane.b32.xlu0 %v1311_v51, %s1969_s11  ;;  %1269 = vrot.lane.b32.xlu1 %v1264_v29, %s1968_s13  ;;  %v866_v22 = vmul.f32 %v864_v12, %v2401_v43  ;;  %v1415_v31 = vmul.f32 %v1414_v50, %v2729_v39  ;;  %v2751_v43 = vld [vmem:[#allocation2 + $0xa] sm:$0xff] }
 0x2a1   : > { %v778_v57 = vpop.permute.xlu1 %777  ;;  %v804_v58 = vpop.permute.xlu0 %803 }
 0x2a2   : > { %v782_v2 = vadd.f32 %v778_v57, %v748_v38  ;;  %v809_v61 = vadd.f32 %v804_v58, %v767_v33  ;;  %v1367_v33 = vmul.f32 %v1366_v17, %v2668_v35  ;;  %v1428_v58 = vstv %s2733_s8  ;;  %s2829_s8 = sld [smem:[#allocation9 + $0x4b]] }
 0x2a3   : > { %1329 = vrot.lane.b32.xlu0 %v1325_v59, %s1969_s11  ;;  %1303 = vrot.lane.b32.xlu1 %v1298_v60, %s1969_s11  ;;  %v956_v59 = vstv %s2737_s9  ;;  %v1429_v62 = vmul.f32 %v1428_v58, %v2729_v39  ;;  %s2838_s9 = sld [smem:[#allocation9 + $0x18]] }
 0x2a4   : > { %v855_v3 = vadd.f32 %v853_v63, %v809_v61  ;;  %v1402_v61 = vmul.f32 %v1400_v40, %v2751_v43 }
 0x2a5   : > { %v792_v4 = vpop.permute.xlu1 %791  ;;  %v818_v5 = vpop.permute.xlu0 %817 }
 0x2a6   : > { %v796_v8 = vadd.f32 %v792_v4, %v754_v49  ;;  %v823_v9 = vadd.f32 %v818_v5, %v781_v45  ;;  %v1401_v45 = vmul.f32 %v1400_v40, %v2729_v39  ;;  %v957_v4 = vmul.f32 %v956_v59, %v2399_v41 }
 0x2a7   : > { %1343 = vrot.lane.b32.xlu0 %v1339_v6, %s1968_s13  ;;  %1317 = vrot.lane.b32.xlu1 %v1312_v7, %s1969_s11  ;;  %v962_v5 = vstv %s2747_s14  ;;  %s2844_s14 = sld [smem:[#allocation9 + $0x4e]] }
 0x2a8   : > { %v861_v13 = vadd.f32 %v859_v11, %v823_v9  ;;  %v1416_v9 = vmul.f32 %v1414_v50, %v2751_v43 }
 0x2a9   : > { %v806_v28 = vpop.permute.xlu1 %805  ;;  %v832_v14 = vpop.permute.xlu0 %831 }
 0x2aa   : > { %v810_v19 = vadd.f32 %v806_v28, %v768_v53  ;;  %v837_v20 = vadd.f32 %v832_v14, %v795_v54  ;;  %v1368_v54 = vmul.f32 %v1366_v17, %v2691_v55  ;;  %v963_v28 = vmul.f32 %v962_v5, %v2399_v41 }
 0x2ab   : > { %1357 = vrot.lane.b32.xlu0 %v1353_v15, %s1968_s13  ;;  %1331 = vrot.lane.b32.xlu1 %v1326_v16, %s1969_s11  ;;  %v968_v14 = vstv %s2759_s15  ;;  %s1729_s15 = smul.u32 768, %s2027_s2  ;;  %s1970_s2 = smov [#allocation12]  }
 0x2ac   : > { %v856_v24 = vadd.f32 %v854_v21, %v810_v19  ;;  %v867_v25 = vadd.f32 %v865_v23, %v837_v20  ;;  %v1430_v19 = vmul.f32 %v1428_v58, %v2751_v43  ;;  %v1470_v21 = vstv %s2763_s17 }
 0x2ad   : > { %v820_v27 = vpop.permute.xlu1 %819  ;;  %v876_v32 = vpop.permute.xlu0 %875  ;;  %v1471_v40 = vmul.f32 %v1470_v21, %v2729_v39  ;;  %v970_v50 = vmul.f32 %v968_v14, %v2407_v0 }
 0x2ae   : > { %v824_v37 = vadd.f32 %v820_v27, %v782_v2  ;;  %v881_v38 = vadd.f32 %v876_v32, %v855_v3  ;;  %v1442_v3 = vstv %s2743_s27  ;;  %v969_v27 = vmul.f32 %v968_v14, %v2399_v41  ;;  %s2841_s27 = sld [smem:[#allocation9 + $0x33]] }
 0x2af   : > { %1371 = vrot.lane.b32.xlu0 %v1367_v33, %s1968_s13  ;;  %1345 = vrot.lane.b32.xlu1 %v1340_v30, %s1968_s13  ;;  %v1443_v10 = vmul.f32 %v1442_v3, %v2729_v39 }
 0x2b0   : > { %v862_v26 = vadd.f32 %v860_v42, %v824_v37 }
 0x2b1   : > { %v834_v36 = vpop.permute.xlu1 %833  ;;  %v890_v44 = vpop.permute.xlu0 %889 }
 0x2b2   : > { %v838_v48 = vadd.f32 %v834_v36, %v796_v8  ;;  %v895_v49 = vadd.f32 %v890_v44, %v861_v13  ;;  %v1456_v13 = vstv %s2754_s25  ;;  %v964_v36 = vmul.f32 %v962_v5, %v2407_v0  ;;  %s276_s25 = scalar_lea.vmem [#allocation12], %s1728_s30 }
 0x2b3   : > { %1405 = vrot.lane.b32.xlu0 %v1401_v45, %s1969_s11  ;;  %1359 = vrot.lane.b32.xlu1 %v1354_v46, %s1968_s13  ;;  %v1457_v20 = vmul.f32 %v1456_v13, %v2729_v39  ;;  %v1458_v46 = vmul.f32 %v1456_v13, %v2751_v43  ;;  %v1072_v5 = vstv %s2799_s12  ;;  %s1506_s30 = sshll.u32 %s276_s25, 4  ;;  %s1493_s12 = scalar_lea.sflag [#allocation6], %s2189_s24  ;;  %s2862_s30 = int_to_ptr.vmem [resolvable:$true] %s1506_s30 }
 0x2b4   : > { %v868_v51 = vadd.f32 %v866_v22, %v838_v48 }
 0x2b5   : > { %v878_v29 = vpop.permute.xlu1 %877  ;;  %v904_v53 = vpop.permute.xlu0 %903 }
 0x2b6   : > { %v882_v56 = vadd.f32 %v878_v29, %v856_v24  ;;  %v909_v57 = vadd.f32 %v904_v53, %v867_v25  ;;  %v958_v25 = vmul.f32 %v956_v59, %v2407_v0  ;;  %v1472_v53 = vmul.f32 %v1470_v21, %v2751_v43 }
 0x2b7   : > { %1373 = vrot.lane.b32.xlu1 %v1368_v54, %s1968_s13  ;;  %1419 = vrot.lane.b32.xlu0 %v1415_v31, %s1969_s11 }
 0x2b9   : > { %v892_v60 = vpop.permute.xlu1 %891  ;;  %v918_v2 = vpop.permute.xlu0 %917 }
 0x2ba   : > { %v896_v63 = vadd.f32 %v892_v60, %v862_v26  ;;  %v923_v1 = vadd.f32 %v918_v2, %v881_v38  ;;  %v1444_v38 = vmul.f32 %v1442_v3, %v2751_v43 }
 0x2bb   : > { %1407 = vrot.lane.b32.xlu1 %v1402_v61, %s1969_s11  ;;  %1433 = vrot.lane.b32.xlu0 %v1429_v62, %s1969_s11 }
 0x2bc   : > { %v959_v6 = vadd.f32 %v957_v4, %v923_v1 }
 0x2bd   : > { %v906_v7 = vpop.permute.xlu1 %905  ;;  %v932_v8 = vpop.permute.xlu0 %931 }
 0x2be   : > { %v910_v11 = vadd.f32 %v906_v7, %v868_v51  ;;  %v937_v12 = vadd.f32 %v932_v8, %v895_v49 }
 0x2bf   : > { %1421 = vrot.lane.b32.xlu1 %v1416_v9, %s1969_s11  ;;  %1447 = vrot.lane.b32.xlu0 %v1443_v10, %s1968_s13 }
 0x2c0   : > { %v965_v15 = vadd.f32 %v963_v28, %v937_v12  ;;  %v1073_v12 = vmul.f32 %v1072_v5, %v2403_v34 }
 0x2c1   : > { %v920_v16 = vpop.permute.xlu1 %919  ;;  %v946_v17 = vpop.permute.xlu0 %945 }
 0x2c2   : > { %v924_v23 = vadd.f32 %v920_v16, %v882_v56  ;;  %v951_v24 = vadd.f32 %v946_v17, %v909_v57  ;;  %v1060_v56 = vstv %s2789_s18 }
 0x2c3   : > { %1435 = vrot.lane.b32.xlu1 %v1430_v19, %s1969_s11  ;;  %1461 = vrot.lane.b32.xlu0 %v1457_v20, %s1968_s13  ;;  %s2794_s11 = sld [smem:[#allocation9 + $0x2a]]  ;;  %v1061_v60 = vmul.f32 %v1060_v56, %v2403_v34 }
 0x2c4   : > { %v960_v32 = vadd.f32 %v958_v25, %v924_v23  ;;  %v971_v33 = vadd.f32 %v969_v27, %v951_v24  ;;  %v1074_v27 = vmul.f32 %v1072_v5, %v2411_v47 }
 0x2c5   : > { %v934_v30 = vpop.permute.xlu1 %933  ;;  %v980_v37 = vpop.permute.xlu0 %979 }
 0x2c6   : > { %v938_v42 = vadd.f32 %v934_v30, %v896_v63  ;;  %v985_v26 = vadd.f32 %v980_v37, %v959_v6 }
 0x2c7   : > { %1449 = vrot.lane.b32.xlu1 %v1444_v38, %s1968_s13  ;;  %1475 = vrot.lane.b32.xlu0 %v1471_v40, %s1968_s13 }
 0x2c8   : > { %v966_v41 = vadd.f32 %v964_v36, %v938_v42 }
 0x2c9   : > { %v948_v44 = vpop.permute.xlu1 %947  ;;  %v994_v45 = vpop.permute.xlu0 %993  ;;  %v1066_v2 = vstv %s2794_s11  ;;  %s2867_s11 = scalar_lea.hbm %s2917_s5, %s1729_s15 }
 0x2ca   : > { %v952_v48 = vadd.f32 %v948_v44, %v910_v11  ;;  %v999_v49 = vadd.f32 %v994_v45, %v965_v15  ;;  %v1067_v4 = vmul.f32 %v1066_v2, %v2403_v34  ;;  %v1062_v11 = vmul.f32 %v1060_v56, %v2411_v47 }
 0x2cb   : > { %1463 = vrot.lane.b32.xlu1 %v1458_v46, %s1968_s13  ;;  %v1068_v19 = vmul.f32 %v1066_v2, %v2411_v47  ;;  %v1180_v44 = vstv %s2811_s6  ;;  %s1888_s6 = sshll.u32 %s1970_s2, 4  ;;  %s1889_s6 = int_to_ptr.vmem [resolvable:$false] %s1888_s6 }
 0x2cc   : > { %v972_v22 = vadd.f32 %v970_v50, %v952_v48  ;;  %v1181_v50 = vmul.f32 %v1180_v44, %v2608_v18  ;;  %p1891_p2 = scmp.lt.s32.totalorder %s2862_s30, %s1889_s6 }
 0x2cd   : > { %v982_v51 = vpop.permute.xlu1 %981  ;;  %v1008_v29 = vpop.permute.xlu0 %1007 }
 0x2ce   : > { %v986_v54 = vadd.f32 %v982_v51, %v960_v32  ;;  %v1013_v31 = vadd.f32 %v1008_v29, %v971_v33 }
 0x2cf   : > { %1477 = vrot.lane.b32.xlu1 %v1472_v53, %s1968_s13  ;;  %s2808_s13 = sld [smem:[#allocation9 + $0x12]] }
 0x2d1   : > { %v996_v57 = vpop.permute.xlu1 %995  ;;  %v1022_v0 = vpop.permute.xlu0 %1021 }
 0x2d2   : > { %v1000_v58 = vadd.f32 %v996_v57, %v966_v41  ;;  %v1027_v59 = vadd.f32 %v1022_v0, %v985_v26 }
 0x2d4   : > { %v1063_v61 = vadd.f32 %v1061_v60, %v1027_v59 }
 0x2d5   : > { %v1010_v62 = vpop.permute.xlu1 %1009  ;;  %v1036_v63 = vpop.permute.xlu0 %1035  ;;  %v1174_v38 = vstv %s2808_s13  ;;  %s1884_s13 = scalar_lea.vmem %s2862_s30, 768 }
 0x2d6   : > { %v1014_v1 = vadd.f32 %v1010_v62, %v972_v22  ;;  %v1041_v3 = vadd.f32 %v1036_v63, %v999_v49  ;;  %v1175_v41 = vmul.f32 %v1174_v38, %v2608_v18  ;;  %v1186_v22 = vstv %s2814_s7  ;;  %p1885_p7 = scmp.ne.s32.totalorder %s2862_s30, %s1884_s13  ;;  %s1890_s7 = scalar_lea.vmem %s1889_s6, 1536 }
 0x2d7   : > { %v1176_v56 = vmul.f32 %v1174_v38, %v2630_v52  ;;  %v1187_v57 = vmul.f32 %v1186_v22, %v2608_v18  ;;  %p1892_p12 = scmp.lt.s32.totalorder %s1890_s7, %s1884_s13 }
 0x2d8   : > { %v1069_v6 = vadd.f32 %v1067_v4, %v1041_v3  ;;  %v1188_v4 = vmul.f32 %v1186_v22, %v2630_v52  ;;  %v1382_v22 = vstv %s2838_s9  ;;  %p1886_p13 = pnand %p1885_p7, %p2952_p11 }
 0x2d9   : > { %v1024_v7 = vpop.permute.xlu1 %1023  ;;  %v1050_v8 = vpop.permute.xlu0 %1049  ;;  %p1893_p10 = por %p1892_p12, %p1891_p2 }
 0x2da   : > { %v1028_v9 = vadd.f32 %v1024_v7, %v986_v54  ;;  %v1055_v10 = vadd.f32 %v1050_v8, %v1013_v31  ;;  %v1278_v7 = vstv %s2823_s16  ;;  %p1887_p9 = pneg %p1886_p13 }
 0x2dc   : > { %v1064_v13 = vadd.f32 %v1062_v11, %v1028_v9  ;;  %v1075_v28 = vadd.f32 %v1073_v12, %v1055_v10  ;;  %v1279_v12 = vmul.f32 %v1278_v7, %v2668_v35  ;;  %p1894_p3 = pnand %p1893_p10, %p1887_p9 }
 0x2dd   : > { %v1038_v14 = vpop.permute.xlu1 %1037  ;;  %v1084_v15 = vpop.permute.xlu0 %1083 }
 0x2de   : > { %v1042_v16 = vadd.f32 %v1038_v14, %v1000_v58  ;;  %v1089_v17 = vadd.f32 %v1084_v15, %v1063_v61  ;;  %v1182_v61 = vmul.f32 %v1180_v44, %v2630_v52 }
 0x2e0   : > { %v1070_v20 = vadd.f32 %v1068_v19, %v1042_v16  ;;  %v1290_v19 = vstv %s2829_s8 }
 0x2e1   : > { %v1052_v21 = vpop.permute.xlu1 %1051  ;;  %v1098_v23 = vpop.permute.xlu0 %1097 }
 0x2e2   : > { %v1056_v24 = vadd.f32 %v1052_v21, %v1014_v1  ;;  %v1103_v25 = vadd.f32 %v1098_v23, %v1069_v6 }
 0x2e4   : > { %v1076_v34 = vadd.f32 %v1074_v27, %v1056_v24 }
 0x2e5   : > { %v1086_v32 = vpop.permute.xlu1 %1085  ;;  %v1112_v33 = vpop.permute.xlu0 %1111 }
 0x2e6   : > { %v1090_v30 = vadd.f32 %v1086_v32, %v1064_v13  ;;  %v1117_v37 = vadd.f32 %v1112_v33, %v1075_v28  ;;  %v1284_v13 = vstv %s2826_s19  ;;  %v1280_v32 = vmul.f32 %v1278_v7, %v2691_v55 }
 0x2e7   : > { %v1291_v33 = vmul.f32 %v1290_v19, %v2668_v35 }
 0x2e9   : > { %v1100_v40 = vpop.permute.xlu1 %1099  ;;  %v1126_v42 = vpop.permute.xlu0 %1125 }
 0x2ea   : > { %v1104_v26 = vadd.f32 %v1100_v40, %v1070_v20  ;;  %v1131_v36 = vadd.f32 %v1126_v42, %v1089_v17  ;;  %v1285_v17 = vmul.f32 %v1284_v13, %v2668_v35 }
 0x2ec   : > { %v1177_v47 = vadd.f32 %v1175_v41, %v1131_v36  ;;  %v1286_v36 = vmul.f32 %v1284_v13, %v2691_v55 }
 0x2ed   : > { %v1114_v45 = vpop.permute.xlu1 %1113  ;;  %v1140_v46 = vpop.permute.xlu0 %1139 }
 0x2ee   : > { %v1118_v48 = vadd.f32 %v1114_v45, %v1076_v34  ;;  %v1145_v49 = vadd.f32 %v1140_v46, %v1103_v25 }
 0x2f0   : > { %v1183_v51 = vadd.f32 %v1181_v50, %v1145_v49 }
 0x2f1   : > { %v1128_v29 = vpop.permute.xlu1 %1127  ;;  %v1154_v53 = vpop.permute.xlu0 %1153 }
 0x2f2   : > { %v1132_v54 = vadd.f32 %v1128_v29, %v1090_v30  ;;  %v1159_v31 = vadd.f32 %v1154_v53, %v1117_v37 }
 0x2f4   : > { %v1178_v0 = vadd.f32 %v1176_v56, %v1132_v54  ;;  %v1189_v58 = vadd.f32 %v1187_v57, %v1159_v31  ;;  %v1383_v31 = vmul.f32 %v1382_v22, %v2729_v39  ;;  %v1388_v56 = vstv %s2841_s27 }
 0x2f5   : > { %v1142_v59 = vpop.permute.xlu1 %1141  ;;  %v1198_v60 = vpop.permute.xlu0 %1197  ;;  %v1390_v13 = vmul.f32 %v1388_v56, %v2751_v43 }
 0x2f6   : > { %v1146_v2 = vadd.f32 %v1142_v59, %v1104_v26  ;;  %v1203_v8 = vadd.f32 %v1198_v60, %v1177_v47  ;;  %v1389_v60 = vmul.f32 %v1388_v56, %v2729_v39 }
 0x2f8   : > { %v1184_v62 = vadd.f32 %v1182_v61, %v1146_v2  ;;  %v1394_v2 = vstv %s2844_s14 }
 0x2f9   : > { %v1156_v63 = vpop.permute.xlu1 %1155  ;;  %v1212_v1 = vpop.permute.xlu0 %1211 }
 0x2fa   : > { %v1160_v3 = vadd.f32 %v1156_v63, %v1118_v48  ;;  %v1217_v28 = vadd.f32 %v1212_v1, %v1183_v51  ;;  %v1292_v48 = vmul.f32 %v1290_v19, %v2691_v55 }
 0x2fc   : > { %v1190_v18 = vadd.f32 %v1188_v4, %v1160_v3 }
 0x2fd   : > { %v1200_v5 = vpop.permute.xlu1 %1199  ;;  %v1226_v6 = vpop.permute.xlu0 %1225 }
 0x2fe   : > { %v1204_v20 = vadd.f32 %v1200_v5, %v1178_v0  ;;  %v1231_v21 = vadd.f32 %v1226_v6, %v1189_v58  ;;  %v1384_v5 = vmul.f32 %v1382_v22, %v2751_v43  ;;  %v1395_v6 = vmul.f32 %v1394_v2, %v2729_v39 }
 0x301   : > { %v1214_v9 = vpop.permute.xlu1 %1213  ;;  %v1240_v10 = vpop.permute.xlu0 %1239 }
 0x302   : > { %v1245_v11 = vadd.f32 %v1240_v10, %v1203_v8  ;;  %v1218_v30 = vadd.f32 %v1214_v9, %v1184_v62 }
 0x304   : > { %v1281_v14 = vadd.f32 %v1279_v12, %v1245_v11 }
 0x305   : > { %v1228_v52 = vpop.permute.xlu1 %1227  ;;  %v1254_v15 = vpop.permute.xlu0 %1253 }
 0x306   : > { %v1259_v16 = vadd.f32 %v1254_v15, %v1217_v28  ;;  %v1232_v41 = vadd.f32 %v1228_v52, %v1190_v18 }
 0x308   : > { %v1287_v23 = vadd.f32 %v1285_v17, %v1259_v16  ;;  %v1396_v17 = vmul.f32 %v1394_v2, %v2751_v43 }
 0x309   : > { %v1242_v24 = vpop.permute.xlu1 %1241  ;;  %v1268_v25 = vpop.permute.xlu0 %1267 }
 0x30a   : > { %v1246_v27 = vadd.f32 %v1242_v24, %v1204_v20  ;;  %v1273_v34 = vadd.f32 %v1268_v25, %v1231_v21 }
 0x30c   : > { %v1282_v37 = vadd.f32 %v1280_v32, %v1246_v27  ;;  %v1293_v38 = vadd.f32 %v1291_v33, %v1273_v34 }
 0x30d   : > { %v1256_v40 = vpop.permute.xlu1 %1255  ;;  %v1302_v42 = vpop.permute.xlu0 %1301 }
 0x30e   : > { %v1260_v26 = vadd.f32 %v1256_v40, %v1218_v30  ;;  %v1307_v51 = vadd.f32 %v1302_v42, %v1281_v14 }
 0x310   : > { %v1288_v44 = vadd.f32 %v1286_v36, %v1260_v26 }
 0x311   : > { %v1270_v47 = vpop.permute.xlu1 %1269  ;;  %v1316_v45 = vpop.permute.xlu0 %1315 }
 0x312   : > { %v1274_v46 = vadd.f32 %v1270_v47, %v1232_v41  ;;  %v1321_v57 = vadd.f32 %v1316_v45, %v1287_v23 }
 0x314   : > { %v1294_v35 = vadd.f32 %v1292_v48, %v1274_v46 }
 0x315   : > { %v1304_v49 = vpop.permute.xlu1 %1303  ;;  %v1330_v50 = vpop.permute.xlu0 %1329 }
 0x316   : > { %v1308_v61 = vadd.f32 %v1304_v49, %v1282_v37  ;;  %v1335_v62 = vadd.f32 %v1330_v50, %v1293_v38 }
 0x319   : > { %v1318_v29 = vpop.permute.xlu1 %1317  ;;  %v1344_v53 = vpop.permute.xlu0 %1343 }
 0x31a   : > { %v1349_v54 = vadd.f32 %v1344_v53, %v1307_v51  ;;  %v1322_v7 = vadd.f32 %v1318_v29, %v1288_v44 }
 0x31c   : > { %v1385_v0 = vadd.f32 %v1383_v31, %v1349_v54 }
 0x31d   : > { %v1332_v55 = vpop.permute.xlu1 %1331  ;;  %v1358_v58 = vpop.permute.xlu0 %1357 }
 0x31e   : > { %v1363_v59 = vadd.f32 %v1358_v58, %v1321_v57  ;;  %v1336_v28 = vadd.f32 %v1332_v55, %v1294_v35 }
 0x320   : > { %v1391_v63 = vadd.f32 %v1389_v60, %v1363_v59 }
 0x321   : > { %v1346_v1 = vpop.permute.xlu1 %1345  ;;  %v1372_v3 = vpop.permute.xlu0 %1371 }
 0x322   : > { %v1350_v4 = vadd.f32 %v1346_v1, %v1308_v61  ;;  %v1377_v18 = vadd.f32 %v1372_v3, %v1335_v62 }
 0x324   : > { %v1386_v8 = vadd.f32 %v1384_v5, %v1350_v4  ;;  %v1397_v9 = vadd.f32 %v1395_v6, %v1377_v18 }
 0x325   : > { %v1360_v10 = vpop.permute.xlu1 %1359  ;;  %v1406_v11 = vpop.permute.xlu0 %1405 }
 0x326   : > { %v1364_v12 = vadd.f32 %v1360_v10, %v1322_v7  ;;  %v1411_v39 = vadd.f32 %v1406_v11, %v1385_v0 }
 0x328   : > { %v1392_v14 = vadd.f32 %v1390_v13, %v1364_v12 }
 0x329   : > { %v1374_v52 = vpop.permute.xlu1 %1373  ;;  %v1420_v15 = vpop.permute.xlu0 %1419 }
 0x32a   : > { %v1378_v16 = vadd.f32 %v1374_v52, %v1336_v28  ;;  %v1425_v27 = vadd.f32 %v1420_v15, %v1391_v63 }
 0x32c   : > { %v1398_v19 = vadd.f32 %v1396_v17, %v1378_v16 }
 0x32d   : > { %v1408_v20 = vpop.permute.xlu1 %1407  ;;  %v1434_v21 = vpop.permute.xlu0 %1433 }
 0x32e   : > { %v1412_v30 = vadd.f32 %v1408_v20, %v1386_v8  ;;  %v1439_v37 = vadd.f32 %v1434_v21, %v1397_v9 }
 0x331   : > { %v1422_v23 = vpop.permute.xlu1 %1421  ;;  %v1448_v24 = vpop.permute.xlu0 %1447 }
 0x332   : > { %v1453_v25 = vadd.f32 %v1448_v24, %v1411_v39  ;;  %v1426_v26 = vadd.f32 %v1422_v23, %v1392_v14 }
 0x334   : > { %1484 = vst.msk [vmem:[%s276_s25] sm:$0xff] %vm1483_vm10, %v1453_v25 }
 0x335   : > { %v1436_v34 = vpop.permute.xlu1 %1435  ;;  %v1462_v32 = vpop.permute.xlu0 %1461 }
 0x336   : > { %v1467_v33 = vadd.f32 %v1462_v32, %v1425_v27  ;;  %v1440_v44 = vadd.f32 %v1436_v34, %v1398_v19 }
 0x338   : > { %1719 = vst.msk [vmem:[%s276_s25 + $0x10] sm:$0xff] %vm1483_vm10, %v1467_v33 }
 0x339   : > { %v1450_v43 = vpop.permute.xlu1 %1449  ;;  %v1476_v38 = vpop.permute.xlu0 %1475 }
 0x33a   : > { %v1454_v40 = vadd.f32 %v1450_v43, %v1412_v30  ;;  %v1481_v42 = vadd.f32 %v1476_v38, %v1439_v37 }
 0x33c   : > { %1485 = vst.msk [vmem:[%s276_s25 + $0x8] sm:$0xff] %vm1483_vm10, %v1454_v40  ;;  %1721 = vst.msk [vmem:[%s276_s25 + $0x20] sm:$0xff] %vm1483_vm10, %v1481_v42 }
 0x33d   : > { %v1464_v36 = vpop.permute.xlu1 %1463 }
 0x33e   : > { %v1468_v41 = vadd.f32 %v1464_v36, %v1426_v26 }
 0x340   : > { %1720 = vst.msk [vmem:[%s276_s25 + $0x18] sm:$0xff] %vm1483_vm10, %v1468_v41 }
 0x341   : > { %v1478_v47 = vpop.permute.xlu1 %1477 }
 0x342   : > { %v1482_v45 = vadd.f32 %v1478_v47, %v1440_v44 }
 0x344   : > { %1722 = vst.msk [vmem:[%s276_s25 + $0x28] sm:$0xff] %vm1483_vm10, %v1482_v45 }
 0x345   : > { %1897 = shalt.err (!%p1894_p3)
}
 0x346   : > { %s1898_s16 = scalar_lea.hbm %s2867_s11, 768  ;;  %s1902_s9 = scalar_lea.hbm %s2917_s5, 1536 }
 0x347   : > { %p1899_p5 = scmp.ne.s32.totalorder %s2867_s11, %s1898_s16  ;;  %p1903_p6 = scmp.lt.u32.totalorder %s2867_s11, %s2917_s5 }
 0x348   : > { %p1904_p8 = scmp.lt.u32.totalorder %s1902_s9, %s1898_s16  ;;  %p1906_p7 = scmp.lt.u32.totalorder %s1898_s16, %s2867_s11 }
 0x349   : > { %p1900_p1 = pnand %p1899_p5, %p2952_p11 }
 0x34a   : > { %p1905_p0 = por %p1904_p8, %p1903_p6 }
 0x34b   : > { %p1901_p4 = pneg %p1900_p1 }
 0x34c   : > { %p1907_p13 = por %p1906_p7, %p1905_p0 }
 0x34e   : > { %p1908_p9 = pnand %p1907_p13, %p1901_p4 }
 0x350   : > { %1911 = shalt.err (!%p1908_p9)
}
 0x351   : > { %s1971_s25 = smov 128   ;;  %s1972_s15 = smov 8  }
 0x352   : > { %1744 = dma.vmem_to_hbm [thread:$0]  (%p2952_p11), %s2862_s30, 768, %s2867_s11, %s1493_s12, %s1971_s25, %s1971_s25, %s1972_s15  }
 0x353 PF: > { %s1521_s17 = sand.u32 1, %s1946_s20   ;;  %p2953_p2 = scmp.ne.s32.totalorder %s2923_s26, 0 }
 0x354   : > { %p2954_p12 = scmp.ge.s32.totalorder %s1958_s23, 2  ;;  %s1522_s18 = scalar_lea.sflag [#allocation6], %s1521_s17 }
 0x356   : > { %p1761_p10 = pnand %p2954_p12, %p2953_p2 }
 0x358   : > { %1941 = dma.done.wait (!%p1761_p10), %s1522_s18, 768  }
 0x359   : > { %1943 = vsyncadd (!%p1761_p10), %s1522_s18, 4294966528  ;;  %p21_p3 = scmp.ge.s32.totalorder %s2054_s28, 4   ;;  %s2955_s20 = smov %s1950_s21 }
 0x35a   : > { %s2956_s21 = smov %s1954_s22  ;;  %s2957_s22 = smov %s2129_s10 }
 0x35b   : > { %s2958_s23 = smov %s2054_s28  ;;  %23 = sbr.rel (!%p21_p3) target bundleno = 9 (0x9), region = 102 }
 0x362   :  { %1527 = vsyncpa [#allocation5], 1 }
 0x363   :  { %1529 = vsyncpa [#allocation5 + $0x1], 1 }
 0x364   :  { %1530 = vsyncpa [#allocation6], 1 }
 0x365   :  { %1532 = vsyncpa [#allocation6 + $0x1], 1 }
 0x366   :  { %1533 = vsyncpa [#allocation7], 1 }
 0x367   :  { %1535 = vsyncpa [#allocation7 + $0x1], 1 }
 0x368   :  { %1536 = vsyncpa [#allocation10], 1 }

</bundles_post_ra>
